<compile_context>
chip_gen: v5e
topology: v5e:2x2
jax: 0.10.0
libtpu: 0.0.40
codegen_flags: <defaults>
</compile_context>

<pallas_src>
import numpy as np
import jax
import jax.numpy as jnp
from jax import lax
from jax.experimental import pallas as pl
from jax.experimental.pallas import tpu as pltpu  # noqa: F401  (TPU backend)

EPS = 1e-5  # nn.BatchNorm2d default eps


# ---------------------------------------------------------------------------
# Host-side constants (built with numpy at trace time)
# ---------------------------------------------------------------------------

def _bilinear_matrix(n_out, n_in):
    """(n_out, n_in) 1-D bilinear-resize matrix, align_corners=True."""
    m = np.zeros((n_out, n_in), np.float32)
    if n_in == 1 or n_out == 1:
        m[:, 0] = 1.0
        return m
    scale = (n_in - 1) / (n_out - 1)
    for o in range(n_out):
        s = o * scale
        i0 = min(int(np.floor(s)), n_in - 1)
        i1 = min(i0 + 1, n_in - 1)
        w = s - i0
        m[o, i0] += 1.0 - w
        m[o, i1] += w
    return m


def _upsample_pad_matrix(h1, w1, h2, w2):
    """(h2*w2, h1*w1) matrix: bilinear 2x upsample (align_corners=True) followed by
    the F.pad zero padding that centres the (2*h1, 2*w1) image inside (h2, w2)."""
    h_up, w_up = 2 * h1, 2 * w1
    dy, dx = h2 - h_up, w2 - w_up
    # TODO(synk): negative diff (cropping) in F.pad is not handled.
    assert dy >= 0 and dx >= 0, "x2 must be at least as large as the upsampled x1"
    uy = np.zeros((h2, h1), np.float32)
    uy[dy // 2: dy // 2 + h_up, :] = _bilinear_matrix(h_up, h1)
    ux = np.zeros((w2, w1), np.float32)
    ux[dx // 2: dx // 2 + w_up, :] = _bilinear_matrix(w_up, w1)
    return np.kron(uy, ux)   # [Y*w2+X, y*w1+x] = uy[Y,y] * ux[X,x]


def _tap_masks(h, w, n):
    """(9, n*h*w) 0/1 masks for the 3x3 (padding=1) taps; also kills the
    cross-row / cross-image wrap introduced by the cyclic lane shifts."""
    m = np.zeros((9, h * w), np.float32)
    ys, xs = np.arange(h), np.arange(w)
    for dy in range(3):
        for dx in range(3):
            vy = ((ys + dy - 1) >= 0) & ((ys + dy - 1) < h)
            vx = ((xs + dx - 1) >= 0) & ((xs + dx - 1) < w)
            m[dy * 3 + dx] = np.outer(vy, vx).reshape(-1).astype(np.float32)
    return np.tile(m, (1, n))


# ---------------------------------------------------------------------------
# Fused Pallas kernel
# ---------------------------------------------------------------------------

def _make_up_kernel(width):
    """All activations inside the kernel are (C, P) with P = N*H*W on the lane axis."""

    def shift_lanes(x, s):
        # y[:, p] = x[:, (p + s) mod P]  (s is a static Python int; wrap positions
        # are killed by the tap masks)
        if s == 0:
            return x
        p = x.shape[1]
        s = s % p
        return jnp.concatenate([x[:, s:], x[:, :s]], axis=1)

    def kernel(x1_ref, upmat_ref, x2_ref, masks_ref,
               w1_ref, b1_ref, w2_ref, b2_ref, o_ref):
        masks = masks_ref[...]                                    # (9, P)

        def conv3x3_bn_relu(x, w_ref, b_ref):
            # im2col via 9 masked cyclic lane shifts, then ONE big-K MXU matmul.
            taps = []
            for dy in range(3):
                for dx in range(3):
                    k = dy * 3 + dx
                    s = (dy - 1) * width + (dx - 1)
                    taps.append(shift_lanes(x, s) * masks[k:k + 1, :])
            patches = jnp.concatenate(taps, axis=0)               # (9*Cin, P)
            h = jnp.dot(w_ref[...], patches,
                        preferred_element_type=jnp.float32) + b_ref[...]
            # BatchNorm2d, training mode: biased batch stats over N,H,W (= lanes)
            mean = jnp.mean(h, axis=1, keepdims=True)
            var = jnp.mean(jnp.square(h - mean), axis=1, keepdims=True)
            h = (h - mean) * lax.rsqrt(var + EPS)
            return jnp.maximum(h, 0.0)                            # ReLU

        # bilinear 2x upsample + F.pad as a single matmul; result is already in
        # the lane-dense (C1, P) layout.
        up = jnp.dot(x1_ref[...], upmat_ref[...],
                     preferred_element_type=jnp.float32)          # (C1, P)
        x = jnp.concatenate([x2_ref[...], up], axis=0)            # cat([x2, x1_up])
        h = conv3x3_bn_relu(x, w1_ref, b1_ref)
        h = conv3x3_bn_relu(h, w2_ref, b2_ref)
        o_ref[...] = h.astype(o_ref.dtype)

    return kernel


# ---------------------------------------------------------------------------
# Public wrapper (PyTorch NCHW layout at the boundary)
# ---------------------------------------------------------------------------

def up_forward(params, x1, x2):
    """Up.forward(x1, x2) with bilinear=True.  x1/x2 are NCHW; output is NCHW."""
    n, c1, h1, w1 = x1.shape
    n2, c2, h2, w2 = x2.shape
    assert n == n2
    cin = c1 + c2
    w_a, b_a, w_b, b_b = params["w1"], params["b1"], params["w2"], params["b2"]
    cmid, cout = w_a.shape[0], w_b.shape[0]
    assert w_a.shape == (cmid, cin, 3, 3) and w_b.shape == (cout, cmid, 3, 3)

    p = n * h2 * w2
    m_img = _upsample_pad_matrix(h1, w1, h2, w2)                  # (h2*w2, h1*w1)
    upmat = np.kron(np.eye(n, dtype=np.float32), m_img.T)         # (n*h1*w1, P)
    masks = _tap_masks(h2, w2, n)                                 # (9, P)

    # lane-dense (C, N*H*W) internal layout; plain transposes at the boundary
    x1f = jnp.transpose(x1, (1, 0, 2, 3)).reshape(c1, n * h1 * w1)
    x2f = jnp.transpose(x2, (1, 0, 2, 3)).reshape(c2, p)
    # (Cout, Cin, 3, 3) -> (Cout, 9*Cin) matching the im2col row ordering
    w1m = jnp.transpose(w_a, (0, 2, 3, 1)).reshape(cmid, 9 * cin)
    w2m = jnp.transpose(w_b, (0, 2, 3, 1)).reshape(cout, 9 * cmid)
    b1c = b_a.reshape(cmid, 1)
    b2c = b_b.reshape(cout, 1)

    out_flat = pl.pallas_call(
        _make_up_kernel(w2),
        out_shape=jax.ShapeDtypeStruct((cout, p), jnp.float32),
    )(x1f, jnp.asarray(upmat), x2f, jnp.asarray(masks), w1m, b1c, w2m, b2c)

    return jnp.transpose(out_flat.reshape(cout, n, h2, w2), (1, 0, 2, 3))


# ---------------------------------------------------------------------------
# Plain-JAX reference (for correctness checking only)
# ---------------------------------------------------------------------------

def up_forward_ref(params, x1, x2):
    n, c1, h1, w1 = x1.shape
    _, c2, h2, w2 = x2.shape
    h_up, w_up = 2 * h1, 2 * w1
    uy = jnp.asarray(_bilinear_matrix(h_up, h1))
    ux = jnp.asarray(_bilinear_matrix(w_up, w1))
    x1u = jnp.einsum("nchw,Hh,Ww->ncHW", x1, uy, ux,
                     precision=lax.Precision.HIGHEST)
    dy, dx = h2 - h_up, w2 - w_up
    x1u = jnp.pad(x1u, ((0, 0), (0, 0),
                        (dy // 2, dy - dy // 2), (dx // 2, dx - dx // 2)))
    x = jnp.concatenate([x2, x1u], axis=1)

    def conv_bn_relu(x, w, b):
        y = lax.conv_general_dilated(
            x, w, window_strides=(1, 1), padding="SAME",
            dimension_numbers=("NCHW", "OIHW", "NCHW"),
            precision=lax.Precision.HIGHEST) + b.reshape(1, -1, 1, 1)
        mean = jnp.mean(y, axis=(0, 2, 3), keepdims=True)
        var = jnp.mean(jnp.square(y - mean), axis=(0, 2, 3), keepdims=True)
        return jnp.maximum((y - mean) / jnp.sqrt(var + EPS), 0.0)

    h = conv_bn_relu(x, params["w1"], params["b1"])
    return conv_bn_relu(h, params["w2"], params["b2"])


# ---------------------------------------------------------------------------
# Parameters (deterministic synthetic init, PyTorch Conv2d layout)
# ---------------------------------------------------------------------------

def init_up_params(key, in_channels, out_channels, bilinear=True):
    mid = in_channels // 2 if bilinear else out_channels
    ks = jax.random.split(key, 4)

    def conv_init(kw, kb, c_out, c_in):
        bound = 1.0 / np.sqrt(c_in * 9)
        w = jax.random.uniform(kw, (c_out, c_in, 3, 3), jnp.float32, -bound, bound)
        b = jax.random.uniform(kb, (c_out,), jnp.float32, -bound, bound)
        return w, b

    w1, b1 = conv_init(ks[0], ks[1], mid, in_channels)
    w2, b2 = conv_init(ks[2], ks[3], out_channels, mid)
    return dict(w1=w1, b1=b1, w2=w2, b2=b2)


# ---------------------------------------------------------------------------

if __name__ == "__main__":
    key = jax.random.PRNGKey(0)
    k1, k2, kw = jax.random.split(key, 3)

    # Up(in_channels=16, out_channels=8, bilinear=True)
    #   x1 (feature from below): (N, 8,  8,  8) -> upsampled to 16x16
    #   x2 (skip connection)   : (N, 8, 16, 16)
    n, in_channels, out_channels = 2, 16, 8
    c1 = in_channels // 2
    c2 = in_channels - c1
    h1 = w1 = 8
    x1 = jax.random.normal(k1, (n, c1, h1, w1), jnp.float32)
    x2 = jax.random.normal(k2, (n, c2, 2 * h1, 2 * w1), jnp.float32)
    params = init_up_params(kw, in_channels, out_channels, bilinear=True)

    fwd = jax.jit(up_forward)
    out = fwd(params, x1, x2)
    jax.block_until_ready(out)
    assert out.shape == (n, out_channels, 2 * h1, 2 * w1)

    # correctness check vs plain-JAX reference (tolerance allows for MXU
    # accumulation-order / precision-mode differences)
    ref = jax.jit(up_forward_ref)(params, x1, x2)
    jax.block_until_ready(ref)
    np.testing.assert_allclose(np.asarray(out), np.asarray(ref),
                               rtol=2e-2, atol=2e-2)

    print("KERNEL_OK")
</pallas_src>

<mosaic_0001>
module attributes {stable_mosaic.version = 11 : i64} {
  func.func @kernel(%arg0: memref<8x128xf32, #tpu.memory_space<vmem>>, %arg1: memref<128x512xf32, #tpu.memory_space<vmem>>, %arg2: memref<8x512xf32, #tpu.memory_space<vmem>>, %arg3: memref<9x512xf32, #tpu.memory_space<vmem>>, %arg4: memref<8x144xf32, #tpu.memory_space<vmem>>, %arg5: memref<8x1xf32, #tpu.memory_space<vmem>>, %arg6: memref<8x72xf32, #tpu.memory_space<vmem>>, %arg7: memref<8x1xf32, #tpu.memory_space<vmem>>, %arg8: memref<8x512xf32, #tpu.memory_space<vmem>>) attributes {dimension_semantics = [], scalar_prefetch = 0 : i64, scratch_operands = 0 : i64, tpu.core_type = #tpu.core_type<tc>} {
    %c0 = arith.constant 0 : index
    %c0_0 = arith.constant 0 : index
    %0 = vector.load %arg3[%c0, %c0_0] : memref<9x512xf32, #tpu.memory_space<vmem>>, vector<9x512xf32>
    %c0_1 = arith.constant 0 : index
    %c0_2 = arith.constant 0 : index
    %1 = vector.load %arg0[%c0_1, %c0_2] : memref<8x128xf32, #tpu.memory_space<vmem>>, vector<8x128xf32>
    %c0_3 = arith.constant 0 : index
    %c0_4 = arith.constant 0 : index
    %2 = vector.load %arg1[%c0_3, %c0_4] : memref<128x512xf32, #tpu.memory_space<vmem>>, vector<128x512xf32>
    %cst = arith.constant dense<0.000000e+00> : vector<8x512xf32>
    %3 = tpu.matmul %1, %2, %cst {dimension_numbers = #tpu.dot_dimension_numbers<[1], [0], [0], [1], [0, 0, 1, 1], [], []>} : vector<8x128xf32>, vector<128x512xf32>, vector<8x512xf32> -> vector<8x512xf32>
    %c0_5 = arith.constant 0 : index
    %c0_6 = arith.constant 0 : index
    %4 = vector.load %arg2[%c0_5, %c0_6] : memref<8x512xf32, #tpu.memory_space<vmem>>, vector<8x512xf32>
    %5 = tpu.concatenate %4, %3 in 0 : vector<8x512xf32>, vector<8x512xf32> -> vector<16x512xf32>
    %6 = vector.extract_strided_slice %5 {offsets = [0, 495], sizes = [16, 17], strides = [1, 1]} : vector<16x512xf32> to vector<16x17xf32>
    %7 = vector.extract_strided_slice %5 {offsets = [0, 0], sizes = [16, 495], strides = [1, 1]} : vector<16x512xf32> to vector<16x495xf32>
    %8 = tpu.concatenate %6, %7 in 1 : vector<16x17xf32>, vector<16x495xf32> -> vector<16x512xf32>
    %9 = vector.extract_strided_slice %0 {offsets = [0, 0], sizes = [1, 512], strides = [1, 1]} : vector<9x512xf32> to vector<1x512xf32>
    %10 = vector.broadcast %9 : vector<1x512xf32> to vector<16x512xf32>
    %11 = arith.mulf %8, %10 : vector<16x512xf32>
    %12 = vector.extract_strided_slice %5 {offsets = [0, 496], sizes = [16, 16], strides = [1, 1]} : vector<16x512xf32> to vector<16x16xf32>
    %13 = vector.extract_strided_slice %5 {offsets = [0, 0], sizes = [16, 496], strides = [1, 1]} : vector<16x512xf32> to vector<16x496xf32>
    %14 = tpu.concatenate %12, %13 in 1 : vector<16x16xf32>, vector<16x496xf32> -> vector<16x512xf32>
    %15 = vector.extract_strided_slice %0 {offsets = [1, 0], sizes = [1, 512], strides = [1, 1]} : vector<9x512xf32> to vector<1x512xf32>
    %16 = vector.broadcast %15 : vector<1x512xf32> to vector<16x512xf32>
    %17 = arith.mulf %14, %16 : vector<16x512xf32>
    %18 = vector.extract_strided_slice %5 {offsets = [0, 497], sizes = [16, 15], strides = [1, 1]} : vector<16x512xf32> to vector<16x15xf32>
    %19 = vector.extract_strided_slice %5 {offsets = [0, 0], sizes = [16, 497], strides = [1, 1]} : vector<16x512xf32> to vector<16x497xf32>
    %20 = tpu.concatenate %18, %19 in 1 : vector<16x15xf32>, vector<16x497xf32> -> vector<16x512xf32>
    %21 = vector.extract_strided_slice %0 {offsets = [2, 0], sizes = [1, 512], strides = [1, 1]} : vector<9x512xf32> to vector<1x512xf32>
    %22 = vector.broadcast %21 : vector<1x512xf32> to vector<16x512xf32>
    %23 = arith.mulf %20, %22 : vector<16x512xf32>
    %24 = vector.extract_strided_slice %5 {offsets = [0, 511], sizes = [16, 1], strides = [1, 1]} : vector<16x512xf32> to vector<16x1xf32>
    %25 = vector.extract_strided_slice %5 {offsets = [0, 0], sizes = [16, 511], strides = [1, 1]} : vector<16x512xf32> to vector<16x511xf32>
    %26 = tpu.concatenate %24, %25 in 1 : vector<16x1xf32>, vector<16x511xf32> -> vector<16x512xf32>
    %27 = vector.extract_strided_slice %0 {offsets = [3, 0], sizes = [1, 512], strides = [1, 1]} : vector<9x512xf32> to vector<1x512xf32>
    %28 = vector.broadcast %27 : vector<1x512xf32> to vector<16x512xf32>
    %29 = arith.mulf %26, %28 : vector<16x512xf32>
    %30 = vector.extract_strided_slice %0 {offsets = [4, 0], sizes = [1, 512], strides = [1, 1]} : vector<9x512xf32> to vector<1x512xf32>
    %31 = vector.broadcast %30 : vector<1x512xf32> to vector<16x512xf32>
    %32 = arith.mulf %5, %31 : vector<16x512xf32>
    %33 = vector.extract_strided_slice %5 {offsets = [0, 1], sizes = [16, 511], strides = [1, 1]} : vector<16x512xf32> to vector<16x511xf32>
    %34 = vector.extract_strided_slice %5 {offsets = [0, 0], sizes = [16, 1], strides = [1, 1]} : vector<16x512xf32> to vector<16x1xf32>
    %35 = tpu.concatenate %33, %34 in 1 : vector<16x511xf32>, vector<16x1xf32> -> vector<16x512xf32>
    %36 = vector.extract_strided_slice %0 {offsets = [5, 0], sizes = [1, 512], strides = [1, 1]} : vector<9x512xf32> to vector<1x512xf32>
    %37 = vector.broadcast %36 : vector<1x512xf32> to vector<16x512xf32>
    %38 = arith.mulf %35, %37 : vector<16x512xf32>
    %39 = vector.extract_strided_slice %5 {offsets = [0, 15], sizes = [16, 497], strides = [1, 1]} : vector<16x512xf32> to vector<16x497xf32>
    %40 = vector.extract_strided_slice %5 {offsets = [0, 0], sizes = [16, 15], strides = [1, 1]} : vector<16x512xf32> to vector<16x15xf32>
    %41 = tpu.concatenate %39, %40 in 1 : vector<16x497xf32>, vector<16x15xf32> -> vector<16x512xf32>
    %42 = vector.extract_strided_slice %0 {offsets = [6, 0], sizes = [1, 512], strides = [1, 1]} : vector<9x512xf32> to vector<1x512xf32>
    %43 = vector.broadcast %42 : vector<1x512xf32> to vector<16x512xf32>
    %44 = arith.mulf %41, %43 : vector<16x512xf32>
    %45 = vector.extract_strided_slice %5 {offsets = [0, 16], sizes = [16, 496], strides = [1, 1]} : vector<16x512xf32> to vector<16x496xf32>
    %46 = vector.extract_strided_slice %5 {offsets = [0, 0], sizes = [16, 16], strides = [1, 1]} : vector<16x512xf32> to vector<16x16xf32>
    %47 = tpu.concatenate %45, %46 in 1 : vector<16x496xf32>, vector<16x16xf32> -> vector<16x512xf32>
    %48 = vector.extract_strided_slice %0 {offsets = [7, 0], sizes = [1, 512], strides = [1, 1]} : vector<9x512xf32> to vector<1x512xf32>
    %49 = vector.broadcast %48 : vector<1x512xf32> to vector<16x512xf32>
    %50 = arith.mulf %47, %49 : vector<16x512xf32>
    %51 = vector.extract_strided_slice %5 {offsets = [0, 17], sizes = [16, 495], strides = [1, 1]} : vector<16x512xf32> to vector<16x495xf32>
    %52 = vector.extract_strided_slice %5 {offsets = [0, 0], sizes = [16, 17], strides = [1, 1]} : vector<16x512xf32> to vector<16x17xf32>
    %53 = tpu.concatenate %51, %52 in 1 : vector<16x495xf32>, vector<16x17xf32> -> vector<16x512xf32>
    %54 = vector.extract_strided_slice %0 {offsets = [8, 0], sizes = [1, 512], strides = [1, 1]} : vector<9x512xf32> to vector<1x512xf32>
    %55 = vector.broadcast %54 : vector<1x512xf32> to vector<16x512xf32>
    %56 = arith.mulf %53, %55 : vector<16x512xf32>
    %57 = tpu.concatenate %11, %17, %23, %29, %32, %38, %44, %50, %56 in 0 : vector<16x512xf32>, vector<16x512xf32>, vector<16x512xf32>, vector<16x512xf32>, vector<16x512xf32>, vector<16x512xf32>, vector<16x512xf32>, vector<16x512xf32>, vector<16x512xf32> -> vector<144x512xf32>
    %c0_7 = arith.constant 0 : index
    %c0_8 = arith.constant 0 : index
    %58 = vector.load %arg4[%c0_7, %c0_8] : memref<8x144xf32, #tpu.memory_space<vmem>>, vector<8x144xf32>
    %cst_9 = arith.constant dense<0.000000e+00> : vector<8x512xf32>
    %59 = tpu.matmul %58, %57, %cst_9 {dimension_numbers = #tpu.dot_dimension_numbers<[1], [0], [0], [1], [0, 0, 1, 1], [], []>} : vector<8x144xf32>, vector<144x512xf32>, vector<8x512xf32> -> vector<8x512xf32>
    %c0_10 = arith.constant 0 : index
    %c0_11 = arith.constant 0 : index
    %60 = vector.load %arg5[%c0_10, %c0_11] : memref<8x1xf32, #tpu.memory_space<vmem>>, vector<8x1xf32>
    %61 = vector.broadcast %60 : vector<8x1xf32> to vector<8x512xf32>
    %62 = arith.addf %59, %61 : vector<8x512xf32>
    %cst_12 = arith.constant dense<0.000000e+00> : vector<8xf32>
    %63 = vector.multi_reduction <add>, %62, %cst_12 [1] : vector<8x512xf32> to vector<8xf32>
    %64 = vector.shape_cast %63 : vector<8xf32> to vector<8x1xf32>
    %cst_13 = arith.constant 5.120000e+02 : f32
    %65 = vector.broadcast %cst_13 : f32 to vector<8x1xf32>
    %66 = arith.divf %64, %65 : vector<8x1xf32>
    %67 = vector.broadcast %66 : vector<8x1xf32> to vector<8x512xf32>
    %68 = arith.subf %62, %67 : vector<8x512xf32>
    %69 = arith.mulf %68, %68 : vector<8x512xf32>
    %cst_14 = arith.constant dense<0.000000e+00> : vector<8xf32>
    %70 = vector.multi_reduction <add>, %69, %cst_14 [1] : vector<8x512xf32> to vector<8xf32>
    %71 = vector.shape_cast %70 : vector<8xf32> to vector<8x1xf32>
    %cst_15 = arith.constant 5.120000e+02 : f32
    %72 = vector.broadcast %cst_15 : f32 to vector<8x1xf32>
    %73 = arith.divf %71, %72 : vector<8x1xf32>
    %74 = vector.broadcast %66 : vector<8x1xf32> to vector<8x512xf32>
    %75 = arith.subf %62, %74 : vector<8x512xf32>
    %cst_16 = arith.constant 9.99999974E-6 : f32
    %76 = vector.broadcast %cst_16 : f32 to vector<8x1xf32>
    %77 = arith.addf %73, %76 : vector<8x1xf32>
    %78 = math.rsqrt %77 : vector<8x1xf32>
    %79 = vector.broadcast %78 : vector<8x1xf32> to vector<8x512xf32>
    %80 = arith.mulf %75, %79 : vector<8x512xf32>
    %cst_17 = arith.constant 0.000000e+00 : f32
    %81 = vector.broadcast %cst_17 : f32 to vector<8x512xf32>
    %82 = arith.maximumf %80, %81 : vector<8x512xf32>
    %83 = vector.extract_strided_slice %82 {offsets = [0, 495], sizes = [8, 17], strides = [1, 1]} : vector<8x512xf32> to vector<8x17xf32>
    %84 = vector.extract_strided_slice %82 {offsets = [0, 0], sizes = [8, 495], strides = [1, 1]} : vector<8x512xf32> to vector<8x495xf32>
    %85 = tpu.concatenate %83, %84 in 1 : vector<8x17xf32>, vector<8x495xf32> -> vector<8x512xf32>
    %86 = vector.extract_strided_slice %0 {offsets = [0, 0], sizes = [1, 512], strides = [1, 1]} : vector<9x512xf32> to vector<1x512xf32>
    %87 = vector.broadcast %86 : vector<1x512xf32> to vector<8x512xf32>
    %88 = arith.mulf %85, %87 : vector<8x512xf32>
    %89 = vector.extract_strided_slice %82 {offsets = [0, 496], sizes = [8, 16], strides = [1, 1]} : vector<8x512xf32> to vector<8x16xf32>
    %90 = vector.extract_strided_slice %82 {offsets = [0, 0], sizes = [8, 496], strides = [1, 1]} : vector<8x512xf32> to vector<8x496xf32>
    %91 = tpu.concatenate %89, %90 in 1 : vector<8x16xf32>, vector<8x496xf32> -> vector<8x512xf32>
    %92 = vector.extract_strided_slice %0 {offsets = [1, 0], sizes = [1, 512], strides = [1, 1]} : vector<9x512xf32> to vector<1x512xf32>
    %93 = vector.broadcast %92 : vector<1x512xf32> to vector<8x512xf32>
    %94 = arith.mulf %91, %93 : vector<8x512xf32>
    %95 = vector.extract_strided_slice %82 {offsets = [0, 497], sizes = [8, 15], strides = [1, 1]} : vector<8x512xf32> to vector<8x15xf32>
    %96 = vector.extract_strided_slice %82 {offsets = [0, 0], sizes = [8, 497], strides = [1, 1]} : vector<8x512xf32> to vector<8x497xf32>
    %97 = tpu.concatenate %95, %96 in 1 : vector<8x15xf32>, vector<8x497xf32> -> vector<8x512xf32>
    %98 = vector.extract_strided_slice %0 {offsets = [2, 0], sizes = [1, 512], strides = [1, 1]} : vector<9x512xf32> to vector<1x512xf32>
    %99 = vector.broadcast %98 : vector<1x512xf32> to vector<8x512xf32>
    %100 = arith.mulf %97, %99 : vector<8x512xf32>
    %101 = vector.extract_strided_slice %82 {offsets = [0, 511], sizes = [8, 1], strides = [1, 1]} : vector<8x512xf32> to vector<8x1xf32>
    %102 = vector.extract_strided_slice %82 {offsets = [0, 0], sizes = [8, 511], strides = [1, 1]} : vector<8x512xf32> to vector<8x511xf32>
    %103 = tpu.concatenate %101, %102 in 1 : vector<8x1xf32>, vector<8x511xf32> -> vector<8x512xf32>
    %104 = vector.extract_strided_slice %0 {offsets = [3, 0], sizes = [1, 512], strides = [1, 1]} : vector<9x512xf32> to vector<1x512xf32>
    %105 = vector.broadcast %104 : vector<1x512xf32> to vector<8x512xf32>
    %106 = arith.mulf %103, %105 : vector<8x512xf32>
    %107 = vector.extract_strided_slice %0 {offsets = [4, 0], sizes = [1, 512], strides = [1, 1]} : vector<9x512xf32> to vector<1x512xf32>
    %108 = vector.broadcast %107 : vector<1x512xf32> to vector<8x512xf32>
    %109 = arith.mulf %82, %108 : vector<8x512xf32>
    %110 = vector.extract_strided_slice %82 {offsets = [0, 1], sizes = [8, 511], strides = [1, 1]} : vector<8x512xf32> to vector<8x511xf32>
    %111 = vector.extract_strided_slice %82 {offsets = [0, 0], sizes = [8, 1], strides = [1, 1]} : vector<8x512xf32> to vector<8x1xf32>
    %112 = tpu.concatenate %110, %111 in 1 : vector<8x511xf32>, vector<8x1xf32> -> vector<8x512xf32>
    %113 = vector.extract_strided_slice %0 {offsets = [5, 0], sizes = [1, 512], strides = [1, 1]} : vector<9x512xf32> to vector<1x512xf32>
    %114 = vector.broadcast %113 : vector<1x512xf32> to vector<8x512xf32>
    %115 = arith.mulf %112, %114 : vector<8x512xf32>
    %116 = vector.extract_strided_slice %82 {offsets = [0, 15], sizes = [8, 497], strides = [1, 1]} : vector<8x512xf32> to vector<8x497xf32>
    %117 = vector.extract_strided_slice %82 {offsets = [0, 0], sizes = [8, 15], strides = [1, 1]} : vector<8x512xf32> to vector<8x15xf32>
    %118 = tpu.concatenate %116, %117 in 1 : vector<8x497xf32>, vector<8x15xf32> -> vector<8x512xf32>
    %119 = vector.extract_strided_slice %0 {offsets = [6, 0], sizes = [1, 512], strides = [1, 1]} : vector<9x512xf32> to vector<1x512xf32>
    %120 = vector.broadcast %119 : vector<1x512xf32> to vector<8x512xf32>
    %121 = arith.mulf %118, %120 : vector<8x512xf32>
    %122 = vector.extract_strided_slice %82 {offsets = [0, 16], sizes = [8, 496], strides = [1, 1]} : vector<8x512xf32> to vector<8x496xf32>
    %123 = vector.extract_strided_slice %82 {offsets = [0, 0], sizes = [8, 16], strides = [1, 1]} : vector<8x512xf32> to vector<8x16xf32>
    %124 = tpu.concatenate %122, %123 in 1 : vector<8x496xf32>, vector<8x16xf32> -> vector<8x512xf32>
    %125 = vector.extract_strided_slice %0 {offsets = [7, 0], sizes = [1, 512], strides = [1, 1]} : vector<9x512xf32> to vector<1x512xf32>
    %126 = vector.broadcast %125 : vector<1x512xf32> to vector<8x512xf32>
    %127 = arith.mulf %124, %126 : vector<8x512xf32>
    %128 = vector.extract_strided_slice %82 {offsets = [0, 17], sizes = [8, 495], strides = [1, 1]} : vector<8x512xf32> to vector<8x495xf32>
    %129 = vector.extract_strided_slice %82 {offsets = [0, 0], sizes = [8, 17], strides = [1, 1]} : vector<8x512xf32> to vector<8x17xf32>
    %130 = tpu.concatenate %128, %129 in 1 : vector<8x495xf32>, vector<8x17xf32> -> vector<8x512xf32>
    %131 = vector.extract_strided_slice %0 {offsets = [8, 0], sizes = [1, 512], strides = [1, 1]} : vector<9x512xf32> to vector<1x512xf32>
    %132 = vector.broadcast %131 : vector<1x512xf32> to vector<8x512xf32>
    %133 = arith.mulf %130, %132 : vector<8x512xf32>
    %134 = tpu.concatenate %88, %94, %100, %106, %109, %115, %121, %127, %133 in 0 : vector<8x512xf32>, vector<8x512xf32>, vector<8x512xf32>, vector<8x512xf32>, vector<8x512xf32>, vector<8x512xf32>, vector<8x512xf32>, vector<8x512xf32>, vector<8x512xf32> -> vector<72x512xf32>
    %c0_18 = arith.constant 0 : index
    %c0_19 = arith.constant 0 : index
    %135 = vector.load %arg6[%c0_18, %c0_19] : memref<8x72xf32, #tpu.memory_space<vmem>>, vector<8x72xf32>
    %cst_20 = arith.constant dense<0.000000e+00> : vector<8x512xf32>
    %136 = tpu.matmul %135, %134, %cst_20 {dimension_numbers = #tpu.dot_dimension_numbers<[1], [0], [0], [1], [0, 0, 1, 1], [], []>} : vector<8x72xf32>, vector<72x512xf32>, vector<8x512xf32> -> vector<8x512xf32>
    %c0_21 = arith.constant 0 : index
    %c0_22 = arith.constant 0 : index
    %137 = vector.load %arg7[%c0_21, %c0_22] : memref<8x1xf32, #tpu.memory_space<vmem>>, vector<8x1xf32>
    %138 = vector.broadcast %137 : vector<8x1xf32> to vector<8x512xf32>
    %139 = arith.addf %136, %138 : vector<8x512xf32>
    %cst_23 = arith.constant dense<0.000000e+00> : vector<8xf32>
    %140 = vector.multi_reduction <add>, %139, %cst_23 [1] : vector<8x512xf32> to vector<8xf32>
    %141 = vector.shape_cast %140 : vector<8xf32> to vector<8x1xf32>
    %cst_24 = arith.constant 5.120000e+02 : f32
    %142 = vector.broadcast %cst_24 : f32 to vector<8x1xf32>
    %143 = arith.divf %141, %142 : vector<8x1xf32>
    %144 = vector.broadcast %143 : vector<8x1xf32> to vector<8x512xf32>
    %145 = arith.subf %139, %144 : vector<8x512xf32>
    %146 = arith.mulf %145, %145 : vector<8x512xf32>
    %cst_25 = arith.constant dense<0.000000e+00> : vector<8xf32>
    %147 = vector.multi_reduction <add>, %146, %cst_25 [1] : vector<8x512xf32> to vector<8xf32>
    %148 = vector.shape_cast %147 : vector<8xf32> to vector<8x1xf32>
    %cst_26 = arith.constant 5.120000e+02 : f32
    %149 = vector.broadcast %cst_26 : f32 to vector<8x1xf32>
    %150 = arith.divf %148, %149 : vector<8x1xf32>
    %151 = vector.broadcast %143 : vector<8x1xf32> to vector<8x512xf32>
    %152 = arith.subf %139, %151 : vector<8x512xf32>
    %cst_27 = arith.constant 9.99999974E-6 : f32
    %153 = vector.broadcast %cst_27 : f32 to vector<8x1xf32>
    %154 = arith.addf %150, %153 : vector<8x1xf32>
    %155 = math.rsqrt %154 : vector<8x1xf32>
    %156 = vector.broadcast %155 : vector<8x1xf32> to vector<8x512xf32>
    %157 = arith.mulf %152, %156 : vector<8x512xf32>
    %cst_28 = arith.constant 0.000000e+00 : f32
    %158 = vector.broadcast %cst_28 : f32 to vector<8x512xf32>
    %159 = arith.maximumf %157, %158 : vector<8x512xf32>
    %c0_29 = arith.constant 0 : index
    %c0_30 = arith.constant 0 : index
    %160 = vector.load %arg8[%c0_29, %c0_30] : memref<8x512xf32, #tpu.memory_space<vmem>>, vector<8x512xf32>
    tpu.vector_store %arg8[%c0_29, %c0_30], %159 {strides = array<i32>} : memref<8x512xf32, #tpu.memory_space<vmem>>, vector<8x512xf32>,
    return
  }
}

</mosaic_0001>

<bundles_post_ra>
// kernel: up_forward.1
= control target key start
LH: loop header
LB: loop body
LE: loop exit
PB: predicated region body
PF: predicated region fallthrough
CT: control target
= control target key end

     0   :  { %s1143_s10 = smov 112   ;;  %s1144_s17 = smov 113   ;;  %vm504_vm0 = vcmask 916480   ;;  %vm457_vm1 = vcmask 924672   ;;  %vm410_vm2 = vcmask 1039360   ;;  %vm353_vm3 = vcmask 7168   ;;  %s2211_s1 = inlined_call_operand.vmem [shape: f32[128,512], index: 1, kind: input, shape index: {}]   ;;  %s2212_s0 = inlined_call_operand.vmem [shape: f32[8,128], index: 0, kind: input, shape index: {}]   ;;  %s2213_s2 = inlined_call_operand.vmem [shape: f32[8,512], index: 2, kind: input, shape index: {}]   ;;  %s2214_s3 = inlined_call_operand.vmem [shape: f32[9,512], index: 3, kind: input, shape index: {}]   ;;  %s2215_s4 = inlined_call_operand.vmem [shape: f32[8,144], index: 4, kind: input, shape index: {}]   ;;  %s2216_s5 = inlined_call_operand.vmem [shape: f32[8,1], index: 5, kind: input, shape index: {}]   ;;  %s2217_s7 = inlined_call_operand.vmem [shape: f32[8,1], index: 7, kind: input, shape index: {}]   ;;  %s2218_s6 = inlined_call_operand.vmem [shape: f32[8,72], index: 6, kind: input, shape index: {}]   ;;  %s2219_s8 = inlined_call_operand.vmem [shape: f32[8,512], index: 8, kind: output, shape index: {}]  }
   0x1   :  { %v98_v0 = vld [vmem:[%s2211_s1 + $0x1e0] sm:$0xff]  ;;  %v99_v1 = vld [vmem:[%s2211_s1 + $0x1e8] sm:$0xff]  ;;  %v101_v10 = vld [vmem:[%s2211_s1 + $0x1f8] sm:$0xff]  ;;  %s1145_s20 = smov 127   ;;  %s1148_s13 = smov 17   ;;  %vm306_vm4 = vcmask 121856  }
   0x2   :  { %v94_v2 = vld [vmem:[%s2211_s1 + $0x1c0] sm:$0xff]  ;;  %102 = vmatpush.msra.mxu0 %v98_v0  ;;  %122 = vmatpush.msra.mxu1 %v99_v1  ;;  %v95_v3 = vld [vmem:[%s2211_s1 + $0x1c8] sm:$0xff]  ;;  %v97_v11 = vld [vmem:[%s2211_s1 + $0x1d8] sm:$0xff]  ;;  %s1149_s14 = smov 16   ;;  %s1150_s15 = smov 111   ;;  %vm551_vm5 = vcmask 908288  }
   0x3   :  { %v90_v4 = vld [vmem:[%s2211_s1 + $0x1a0] sm:$0xff]  ;;  %v91_v5 = vld [vmem:[%s2211_s1 + $0x1a8] sm:$0xff]  ;;  %162 = vmatpush.msra.mxu3 %v101_v10  ;;  %v93_v14 = vld [vmem:[%s2211_s1 + $0x1b8] sm:$0xff]  ;;  %vm259_vm6 = vcmask 130048   ;;  %vm212_vm7 = vcmask 138240   ;;  %vm982_vm12 = vcmask 588800  }
   0x4   :  { %103 = vmatpush.msra.mxu0 %v94_v2  ;;  %123 = vmatpush.msra.mxu1 %v95_v3  ;;  %v86_v6 = vld [vmem:[%s2211_s1 + $0x180] sm:$0xff]  ;;  %v87_v7 = vld [vmem:[%s2211_s1 + $0x188] sm:$0xff]  ;;  %v89_v17 = vld [vmem:[%s2211_s1 + $0x198] sm:$0xff] }
   0x5   :  { %v82_v8 = vld [vmem:[%s2211_s1 + $0x160] sm:$0xff]  ;;  %v83_v9 = vld [vmem:[%s2211_s1 + $0x168] sm:$0xff]  ;;  %163 = vmatpush.msra.mxu3 %v97_v11  ;;  %v85_v20 = vld [vmem:[%s2211_s1 + $0x178] sm:$0xff] }
   0x6   :  { %104 = vmatpush.msra.mxu0 %v90_v4  ;;  %124 = vmatpush.msra.mxu1 %v91_v5  ;;  %v78_v12 = vld [vmem:[%s2211_s1 + $0x140] sm:$0xff]  ;;  %v79_v13 = vld [vmem:[%s2211_s1 + $0x148] sm:$0xff]  ;;  %v100_v21 = vld [vmem:[%s2211_s1 + $0x1f0] sm:$0xff] }
   0x7   :  { %v74_v15 = vld [vmem:[%s2211_s1 + $0x120] sm:$0xff]  ;;  %v75_v16 = vld [vmem:[%s2211_s1 + $0x128] sm:$0xff]  ;;  %164 = vmatpush.msra.mxu3 %v93_v14  ;;  %142 = vmatpush.msra.mxu2 %v100_v21  ;;  %v96_v24 = vld [vmem:[%s2211_s1 + $0x1d0] sm:$0xff] }
   0x8   :  { %105 = vmatpush.msra.mxu0 %v86_v6  ;;  %125 = vmatpush.msra.mxu1 %v87_v7  ;;  %v70_v18 = vld [vmem:[%s2211_s1 + $0x100] sm:$0xff]  ;;  %v71_v19 = vld [vmem:[%s2211_s1 + $0x108] sm:$0xff]  ;;  %v81_v25 = vld [vmem:[%s2211_s1 + $0x158] sm:$0xff] }
   0x9   :  { %v66_v22 = vld [vmem:[%s2211_s1 + $0xe0] sm:$0xff]  ;;  %v67_v23 = vld [vmem:[%s2211_s1 + $0xe8] sm:$0xff]  ;;  %165 = vmatpush.msra.mxu3 %v89_v17  ;;  %v92_v26 = vld [vmem:[%s2211_s1 + $0x1b0] sm:$0xff]  ;;  %143 = vmatpush.msra.mxu2 %v96_v24 }
   0xa   :  { %106 = vmatpush.msra.mxu0 %v82_v8  ;;  %126 = vmatpush.msra.mxu1 %v83_v9  ;;  %v62_v27 = vld [vmem:[%s2211_s1 + $0xc0] sm:$0xff]  ;;  %v63_v28 = vld [vmem:[%s2211_s1 + $0xc8] sm:$0xff]  ;;  %v77_v29 = vld [vmem:[%s2211_s1 + $0x138] sm:$0xff] }
   0xb   :  { %166 = vmatpush.msra.mxu3 %v85_v20  ;;  %v88_v30 = vld [vmem:[%s2211_s1 + $0x190] sm:$0xff]  ;;  %v58_v31 = vld [vmem:[%s2211_s1 + $0xa0] sm:$0xff]  ;;  %v59_v32 = vld [vmem:[%s2211_s1 + $0xa8] sm:$0xff]  ;;  %144 = vmatpush.msra.mxu2 %v92_v26 }
   0xc   :  { %107 = vmatpush.msra.mxu0 %v78_v12  ;;  %127 = vmatpush.msra.mxu1 %v79_v13  ;;  %v73_v33 = vld [vmem:[%s2211_s1 + $0x118] sm:$0xff]  ;;  %v84_v34 = vld [vmem:[%s2211_s1 + $0x170] sm:$0xff]  ;;  %v54_v35 = vld [vmem:[%s2211_s1 + $0x80] sm:$0xff] }
   0xd   :  { %167 = vmatpush.msra.mxu3 %v81_v25  ;;  %v55_v36 = vld [vmem:[%s2211_s1 + $0x88] sm:$0xff]  ;;  %145 = vmatpush.msra.mxu2 %v88_v30  ;;  %v69_v37 = vld [vmem:[%s2211_s1 + $0xf8] sm:$0xff]  ;;  %v80_v38 = vld [vmem:[%s2211_s1 + $0x150] sm:$0xff] }
   0xe   :  { %108 = vmatpush.msra.mxu0 %v74_v15  ;;  %128 = vmatpush.msra.mxu1 %v75_v16  ;;  %v50_v39 = vld [vmem:[%s2211_s1 + $0x60] sm:$0xff]  ;;  %v51_v40 = vld [vmem:[%s2211_s1 + $0x68] sm:$0xff]  ;;  %v65_v41 = vld [vmem:[%s2211_s1 + $0xd8] sm:$0xff] }
   0xf   :  { %168 = vmatpush.msra.mxu3 %v77_v29  ;;  %146 = vmatpush.msra.mxu2 %v84_v34  ;;  %v76_v42 = vld [vmem:[%s2211_s1 + $0x130] sm:$0xff]  ;;  %v46_v43 = vld [vmem:[%s2211_s1 + $0x40] sm:$0xff]  ;;  %v47_v44 = vld [vmem:[%s2211_s1 + $0x48] sm:$0xff] }
  0x10   :  { %109 = vmatpush.msra.mxu0 %v70_v18  ;;  %129 = vmatpush.msra.mxu1 %v71_v19  ;;  %v61_v45 = vld [vmem:[%s2211_s1 + $0xb8] sm:$0xff]  ;;  %v72_v46 = vld [vmem:[%s2211_s1 + $0x110] sm:$0xff]  ;;  %v42_v47 = vld [vmem:[%s2211_s1 + $0x20] sm:$0xff] }
  0x11   :  { %169 = vmatpush.msra.mxu3 %v73_v33  ;;  %147 = vmatpush.msra.mxu2 %v80_v38  ;;  %v43_v48 = vld [vmem:[%s2211_s1 + $0x28] sm:$0xff]  ;;  %v38_v49 = vld [vmem:[%s2211_s1] sm:$0xff]  ;;  %v57_v51 = vld [vmem:[%s2211_s1 + $0x98] sm:$0xff] }
  0x12   :  { %110 = vmatpush.msra.mxu0 %v66_v22  ;;  %130 = vmatpush.msra.mxu1 %v67_v23  ;;  %v39_v50 = vld [vmem:[%s2211_s1 + $0x8] sm:$0xff]  ;;  %v68_v52 = vld [vmem:[%s2211_s1 + $0xf0] sm:$0xff]  ;;  %v37_v53 = vld [vmem:[%s2212_s0] sm:$0xff] }
  0x13   :  { %170 = vmatpush.msra.mxu3 %v69_v37  ;;  %148 = vmatpush.msra.mxu2 %v76_v42  ;;  %v53_v54 = vld [vmem:[%s2211_s1 + $0x78] sm:$0xff]  ;;  %v1366_v55 = vld [vmem:[%s2213_s2 + $0x8] sm:$0xff]  ;;  %v64_v56 = vld [vmem:[%s2211_s1 + $0xd0] sm:$0xff] }
  0x14   :  { %111 = vmatpush.msra.mxu0 %v62_v27  ;;  %131 = vmatpush.msra.mxu1 %v63_v28  ;;  %v49_v57 = vld [vmem:[%s2211_s1 + $0x58] sm:$0xff]  ;;  %v60_v58 = vld [vmem:[%s2211_s1 + $0xb0] sm:$0xff]  ;;  %v1411_v2 = vld [vmem:[%s2213_s2] sm:$0xff] }
  0x15   :  { %171 = vmatpush.msra.mxu3 %v65_v41  ;;  %149 = vmatpush.msra.mxu2 %v72_v46  ;;  %v45_v59 = vld [vmem:[%s2211_s1 + $0x38] sm:$0xff]  ;;  %v1385_v60 = vld [vmem:[%s2213_s2 + $0x10] sm:$0xff] }
  0x16   :  { %112 = vmatpush.msra.mxu0 %v58_v31  ;;  %132 = vmatpush.msra.mxu1 %v59_v32  ;;  %v56_v61 = vld [vmem:[%s2211_s1 + $0x90] sm:$0xff]  ;;  %v41_v62 = vld [vmem:[%s2211_s1 + $0x18] sm:$0xff] }
  0x17   :  { %172 = vmatpush.msra.mxu3 %v61_v45  ;;  %150 = vmatpush.msra.mxu2 %v68_v52  ;;  %v52_v63 = vld [vmem:[%s2211_s1 + $0x70] sm:$0xff]  ;;  %v1406_v1 = vld [vmem:[%s2213_s2 + $0x18] sm:$0xff]  ;;  %s1146_s2 = smov 15  }
  0x18   :  { %113 = vmatpush.msra.mxu0 %v54_v35  ;;  %133 = vmatpush.msra.mxu1 %v55_v36  ;;  %v48_v0 = vld [vmem:[%s2211_s1 + $0x50] sm:$0xff] }
  0x19   :  { %173 = vmatpush.msra.mxu3 %v57_v51  ;;  %490 = vrot.lane.b32.xlu1 %v1366_v55, %s1143_s10  ;;  %v44_v3 = vld [vmem:[%s2211_s1 + $0x30] sm:$0xff] }
  0x1a   :  { %114 = vmatpush.msra.mxu0 %v50_v39  ;;  %134 = vmatpush.msra.mxu1 %v51_v40  ;;  %v40_v4 = vld [vmem:[%s2211_s1 + $0x10] sm:$0xff]  ;;  %s1147_s1 = smov 1  }
  0x1b   :  { %174 = vmatpush.msra.mxu3 %v53_v54  ;;  %151 = vmatpush.msra.mxu2 %v64_v56 }
  0x1c   :  { %115 = vmatpush.msra.mxu0 %v46_v43  ;;  %135 = vmatpush.msra.mxu1 %v47_v44 }
  0x1d   :  { %443 = vrot.lane.b32.xlu0 %v1366_v55, %s1144_s17  ;;  %175 = vmatpush.msra.mxu3 %v49_v57 }
  0x1e   :  { %116 = vmatpush.msra.mxu0 %v42_v47  ;;  %136 = vmatpush.msra.mxu1 %v43_v48 }
  0x1f   :  { %398 = vrot.lane.b32.xlu2 %v1385_v60, %s1145_s20  ;;  %152 = vmatpush.msra.mxu2 %v60_v58 }
  0x20   :  { %117 = vmatpush.msra.mxu0 %v38_v49  ;;  %137 = vmatpush.msra.mxu1 %v39_v50 }
  0x21   :  { %118 = vmatmul.f32.vlgmr.msra.gmra.mxu0 %v37_v53  ;;  %138 = vmatmul.f32.vlgmr.msra.gmra.mxu1 %v37_v53 }
  0x22   :  { %176 = vmatpush.msra.mxu3 %v45_v59  ;;  %153 = vmatpush.msra.mxu2 %v56_v61 }
  0x23   :  { %492 = vrot.lane.b32.xlu1 %v1385_v60, %s1143_s10 }
  0x24   :  { %177 = vmatpush.msra.mxu3 %v41_v62  ;;  %154 = vmatpush.msra.mxu2 %v52_v63 }
  0x25   :  { %178 = vmatmul.f32.vlgmr.msra.gmra.mxu3 %v37_v53  ;;  %494 = vrot.lane.b32.xlu0 %v1406_v1, %s1143_s10 }
  0x26   :  { %155 = vmatpush.msra.mxu2 %v48_v0 }
  0x27   :  { %488 = vrot.lane.b32.xlu2 %v1411_v2, %s1143_s10 }
  0x28   :  { %156 = vmatpush.msra.mxu2 %v44_v3 }
  0x2a   :  { %157 = vmatpush.msra.mxu2 %v40_v4 }
  0x2b   :  { %158 = vmatmul.f32.vlgmr.msra.gmra.mxu2 %v37_v53  ;;  %445 = vrot.lane.b32.xlu1 %v1385_v60, %s1144_s17 }
  0x2d   :  { %447 = vrot.lane.b32.xlu0 %v1406_v1, %s1144_s17 }
  0x2f   :  { %441 = vrot.lane.b32.xlu2 %v1411_v2, %s1144_s17 }
  0x33   :  { %396 = vrot.lane.b32.xlu1 %v1366_v55, %s1145_s20 }
  0x35   :  { %294 = vrot.lane.b32.xlu0 %v1411_v2, %s1146_s2 }
  0x37   :  { %343 = vrot.lane.b32.xlu2 %v1366_v55, %s1147_s1 }
  0x3b   :  { %341 = vrot.lane.b32.xlu1 %v1411_v2, %s1147_s1 }
  0x3d   :  { %200 = vrot.lane.b32.xlu0 %v1411_v2, %s1148_s13 }
  0x3f   :  { %400 = vrot.lane.b32.xlu2 %v1406_v1, %s1145_s20 }
  0x43   :  { %394 = vrot.lane.b32.xlu1 %v1411_v2, %s1145_s20 }
  0x45   :  { %288 = vrot.lane.b32.xlu0 %v1406_v1, %s1146_s2 }
  0x47   :  { %249 = vrot.lane.b32.xlu2 %v1366_v55, %s1149_s14 }
  0x4b   :  { %296 = vrot.lane.b32.xlu1 %v1366_v55, %s1146_s2 }
  0x4d   :  { %541 = vrot.lane.b32.xlu0 %v1406_v1, %s1150_s15 }
  0x4f   :  { %345 = vrot.lane.b32.xlu2 %v1385_v60, %s1147_s1 }
  0x53   :  { %247 = vrot.lane.b32.xlu1 %v1411_v2, %s1149_s14 }
  0x55   :  { %251 = vrot.lane.b32.xlu0 %v1385_v60, %s1149_s14 }
  0x57   :  { %539 = vrot.lane.b32.xlu2 %v1385_v60, %s1150_s15 }
  0x5b   :  { %335 = vrot.lane.b32.xlu1 %v1406_v1, %s1147_s1 }
  0x5f   :  { %241 = vrot.lane.b32.xlu2 %v1406_v1, %s1149_s14 }
  0x63   :  { %202 = vrot.lane.b32.xlu1 %v1366_v55, %s1148_s13 }
  0x67   :  { %537 = vrot.lane.b32.xlu2 %v1366_v55, %s1150_s15 }
  0x6b   :  { %298 = vrot.lane.b32.xlu1 %v1385_v60, %s1146_s2 }
  0x73   :  { %535 = vrot.lane.b32.xlu1 %v1411_v2, %s1150_s15 }
  0x79   :  { %v399_v5 = vpop.permute.xlu2 %398 }
  0x81   :  { %v489_v6 = vpop.permute.xlu2 %488 }
  0x89   :  { %v442_v10 = vpop.permute.xlu2 %441 }
  0x8b   :  { %v491_v7 = vpop.permute.xlu1 %490 }
  0x8c   :  { %v1474_v8 = vsel %vm504_vm0, %v489_v6, %v491_v7 }
  0x8f   :  { %v444_v9 = vpop.permute.xlu0 %443 }
  0x90   :  { %v1477_v11 = vsel %vm457_vm1, %v442_v10, %v444_v9 }
  0x91   :  { %v344_v17 = vpop.permute.xlu2 %343 }
  0x95   :  { %v493_v12 = vpop.permute.xlu1 %492 }
  0x96   :  { %v1480_v13 = vsel %vm504_vm0, %v491_v7, %v493_v12 }
  0x97   :  { %v495_v16 = vpop.permute.xlu0 %494 }
  0x98   :  { %v1493_v18 = vsel %vm504_vm0, %v493_v12, %v495_v16  ;;  %v1496_v19 = vsel %vm504_vm0, %v495_v16, %v489_v6 }
  0x99   :  { %v401_v23 = vpop.permute.xlu2 %400 }
  0x9a   :  { %v1514_v26 = vsel %vm410_vm2, %v399_v5, %v401_v23 }
  0x9d   :  { %v446_v20 = vpop.permute.xlu1 %445 }
  0x9e   :  { %v1482_v14 = vpop.f32.mrf.mxu0  ;;  %v1484_v15 = vpop.f32.mrf.mxu1  ;;  %v1499_v21 = vsel %vm457_vm1, %v444_v9, %v446_v20 }
  0x9f   :  { %451 = vrot.lane.b32.xlu2 %v1484_v15, %s1144_s17  ;;  %498 = vrot.lane.b32.xlu0 %v1484_v15, %s1143_s10  ;;  %v448_v22 = vpop.permute.xlu0 %447 }
  0xa0   :  { %449 = vrot.lane.b32.xlu1 %v1482_v14, %s1144_s17  ;;  %v1508_v24 = vsel %vm457_vm1, %v446_v20, %v448_v22  ;;  %v1511_v25 = vsel %vm457_vm1, %v448_v22, %v442_v10  ;;  %v1650_v20 = vld [vmem:[%s2214_s3] sm:$0xff] }
  0xa1   :  { %v250_v30 = vpop.permute.xlu2 %249 }
  0xa5   :  { %v397_v27 = vpop.permute.xlu1 %396 }
  0xa6   :  { %v1517_v28 = vsel %vm410_vm2, %v397_v27, %v399_v5 }
  0xa7   :  { %404 = vrot.lane.b32.xlu2 %v1484_v15, %s1145_s20  ;;  %496 = vrot.lane.b32.xlu0 %v1482_v14, %s1143_s10  ;;  %v295_v29 = vpop.permute.xlu0 %294 }
  0xa8   :  { %349 = vrot.lane.b32.xlu1 %v1484_v15, %s1147_s1  ;;  %v1525_v32 = vpop.f32.mrf.mxu3 }
  0xa9   :  { %v346_v35 = vpop.permute.xlu2 %345 }
  0xaa   :  { %v1539_v36 = vsel %vm353_vm3, %v344_v17, %v346_v35 }
  0xad   :  { %v342_v31 = vpop.permute.xlu1 %341 }
  0xae   :  { %v1528_v33 = vsel %vm353_vm3, %v342_v31, %v344_v17  ;;  %v1556_v43 = vpop.f32.mrf.mxu2 }
  0xaf   :  { %300 = vrot.lane.b32.xlu2 %v1482_v14, %s1146_s2  ;;  %347 = vrot.lane.b32.xlu0 %v1482_v14, %s1147_s1  ;;  %v1536_v34 = vpop.permute.xlu0 %200 }
  0xb0   :  { %545 = vrot.lane.b32.xlu1 %v1484_v15, %s1150_s15 }
  0xb1   :  { %v540_v41 = vpop.permute.xlu2 %539 }
  0xb5   :  { %v395_v37 = vpop.permute.xlu1 %394 }
  0xb6   :  { %v1542_v38 = vsel %vm410_vm2, %v395_v37, %v397_v27  ;;  %v1545_v39 = vsel %vm410_vm2, %v401_v23, %v395_v37  ;;  %v1653_v23 = vperm.slane %v1650_v20, 7 }
  0xb7   :  { %253 = vrot.lane.b32.xlu2 %v1482_v14, %s1149_s14  ;;  %402 = vrot.lane.b32.xlu0 %v1482_v14, %s1145_s20  ;;  %v289_v40 = vpop.permute.xlu0 %288 }
  0xb8   :  { %502 = vrot.lane.b32.xlu1 %v1525_v32, %s1143_s10  ;;  %v1554_v42 = vsel %vm306_vm4, %v289_v40, %v295_v29  ;;  %2231 = vst [vmem:[#allocation5_spill] sm:$0xff] %v1653_v23  ;;  %v527_v37 = vmul.f32 %v1653_v23, %v1474_v8 }
  0xb9   :  { %v242_v47 = vpop.permute.xlu2 %241 }
  0xbd   :  { %v297_v44 = vpop.permute.xlu1 %296 }
  0xbe   :  { %v1559_v45 = vsel %vm306_vm4, %v295_v29, %v297_v44 }
  0xbf   :  { %206 = vrot.lane.b32.xlu2 %v1482_v14, %s1148_s13  ;;  %302 = vrot.lane.b32.xlu0 %v1484_v15, %s1146_s2  ;;  %v542_v46 = vpop.permute.xlu0 %541 }
  0xc0   :  { %408 = vrot.lane.b32.xlu1 %v1525_v32, %s1145_s20  ;;  %v1568_v48 = vsel %vm551_vm5, %v540_v41, %v542_v46 }
  0xc1   :  { %v538_v53 = vpop.permute.xlu2 %537 }
  0xc2   :  { %v1589_v57 = vsel %vm551_vm5, %v538_v53, %v540_v41 }
  0xc3   :  { %2229 = vst [vmem:[#allocation3_spill] sm:$0xff] %v1589_v57 }
  0xc5   :  { %v248_v49 = vpop.permute.xlu1 %247 }
  0xc6   :  { %v1571_v50 = vsel %vm259_vm6, %v248_v49, %v250_v30  ;;  %v1574_v51 = vsel %vm259_vm6, %v242_v47, %v248_v49 }
  0xc7   :  { %453 = vrot.lane.b32.xlu2 %v1556_v43, %s1144_s17  ;;  %255 = vrot.lane.b32.xlu0 %v1484_v15, %s1149_s14  ;;  %v252_v52 = vpop.permute.xlu0 %251 }
  0xc8   :  { %351 = vrot.lane.b32.xlu1 %v1556_v43, %s1147_s1  ;;  %v1583_v54 = vsel %vm259_vm6, %v250_v30, %v252_v52  ;;  %v1586_v56 = vsel %vm259_vm6, %v252_v52, %v242_v47 }
  0xc9   :  { %2228 = vst [vmem:[#allocation2_spill] sm:$0xff] %v1586_v56 }
  0xcd   :  { %v336_v58 = vpop.permute.xlu1 %335 }
  0xce   :  { %v1592_v59 = vsel %vm353_vm3, %v346_v35, %v336_v58  ;;  %v1595_v61 = vsel %vm353_vm3, %v336_v58, %v342_v31 }
  0xcf   :  { %455 = vrot.lane.b32.xlu2 %v1525_v32, %s1144_s17  ;;  %208 = vrot.lane.b32.xlu0 %v1484_v15, %s1148_s13 }
  0xd0   :  { %547 = vrot.lane.b32.xlu1 %v1556_v43, %s1150_s15 }
  0xd5   :  { %v1603_v62 = vpop.permute.xlu1 %202 }
  0xd7   :  { %290 = vrot.lane.b32.xlu2 %v1525_v32, %s1146_s2  ;;  %543 = vrot.lane.b32.xlu0 %v1482_v14, %s1150_s15 }
  0xd8   :  { %243 = vrot.lane.b32.xlu1 %v1525_v32, %s1149_s14 }
  0xdd   :  { %v299_v63 = vpop.permute.xlu1 %298 }
  0xde   :  { %v1612_v0 = vsel %vm306_vm4, %v297_v44, %v299_v63  ;;  %v1615_v3 = vsel %vm306_vm4, %v299_v63, %v289_v40  ;;  %v1667_v40 = vperm.slane %v1650_v20, 6 }
  0xdf   :  { %549 = vrot.lane.b32.xlu2 %v1525_v32, %s1150_s15  ;;  %500 = vrot.lane.b32.xlu0 %v1556_v43, %s1143_s10 }
  0xe0   :  { %210 = vrot.lane.b32.xlu1 %v1556_v43, %s1148_s13  ;;  %2232 = vst [vmem:[#allocation6_spill] sm:$0xff] %v1667_v40 }
  0xe5   :  { %v536_v4 = vpop.permute.xlu1 %535 }
  0xe6   :  { %v1622_v5 = vsel %vm551_vm5, %v536_v4, %v538_v53  ;;  %v1625_v6 = vsel %vm551_vm5, %v542_v46, %v536_v4  ;;  %v480_v46 = vmul.f32 %v1667_v40, %v1477_v11  ;;  %v1684_v53 = vperm.slane %v1650_v20, 5 }
  0xe7   :  { %257 = vrot.lane.b32.xlu2 %v1556_v43, %s1149_s14  ;;  %406 = vrot.lane.b32.xlu0 %v1556_v43, %s1145_s20  ;;  %2230 = vst [vmem:[#allocation4_spill] sm:$0xff] %v1625_v6  ;;  %v1690_v4 = vperm.slane %v1650_v20, 4 }
  0xe8   :  { %2233 = vst [vmem:[#allocation7_spill] sm:$0xff] %v1684_v53 }
  0xe9   :  { %2234 = vst [vmem:[#allocation8_spill] sm:$0xff] %v1690_v4 }
  0xef   :  { %188 = vrot.lane.b32.xlu2 %v1406_v1, %s1148_s13  ;;  %337 = vrot.lane.b32.xlu0 %v1525_v32, %s1147_s1 }
  0xf7   :  { %304 = vrot.lane.b32.xlu0 %v1556_v43, %s1146_s2 }
  0xf9   :  { %v1633_v7 = vpop.permute.xlu2 %451 }
  0xff   :  { %190 = vrot.lane.b32.xlu0 %v1525_v32, %s1148_s13 }
 0x101   :  { %v1637_v9 = vpop.permute.xlu2 %404 }
 0x107   :  { %204 = vrot.lane.b32.xlu0 %v1385_v60, %s1148_s13 }
 0x109   :  { %v1641_v10 = vpop.permute.xlu2 %300 }
 0x111   :  { %v1643_v12 = vpop.permute.xlu0 %498  ;;  %v1645_v16 = vpop.permute.xlu2 %253 }
 0x112   :  { %v450_v17 = vpop.permute.xlu1 %449 }
 0x113   :  { %v461_v35 = vsel %vm457_vm1, %v450_v17, %v1633_v7 }
 0x114   :  { %v484_v41 = vmul.f32 %v1667_v40, %v461_v35  ;;  %v390_v35 = vmul.f32 %v1690_v4, %v1482_v14  ;;  %v1715_v14 = vld [vmem:[%s2214_s3 + $0x30] ss:$0 sm:$0xff] }
 0x119   :  { %v497_v22 = vpop.permute.xlu0 %496  ;;  %v1655_v27 = vpop.permute.xlu2 %206 }
 0x11a   :  { %v1657_v29 = vpop.permute.xlu1 %349  ;;  %v508_v30 = vsel %vm504_vm0, %v497_v22, %v1643_v12 }
 0x11b   :  { %v531_v31 = vmul.f32 %v1653_v23, %v508_v30  ;;  %v433_v30 = vmul.f32 %v1684_v53, %v1542_v38 }
 0x11d   :  { %593 = vmatpush.msrb.mxu0 %v531_v31 }
 0x11f   :  { %594 = vmatpush.msrb.mxu0 %v527_v37 }
 0x121   :  { %595 = vmatpush.msrb.mxu0 %v484_v41  ;;  %v1670_v44 = vpop.permute.xlu0 %347  ;;  %v1681_v8 = vpop.permute.xlu2 %453 }
 0x122   :  { %v1674_v47 = vpop.permute.xlu1 %545  ;;  %v1679_v49 = vsel %vm353_vm3, %v1670_v44, %v1657_v29 }
 0x123   :  { %596 = vmatpush.msrb.mxu0 %v480_v46 }
 0x129   :  { %v403_v52 = vpop.permute.xlu0 %402  ;;  %v456_v31 = vpop.permute.xlu2 %455 }
 0x12a   :  { %v503_v58 = vpop.permute.xlu1 %502  ;;  %v414_v63 = vsel %vm410_vm2, %v403_v52, %v1637_v9 }
 0x12b   :  { %v437_v11 = vmul.f32 %v1684_v53, %v414_v63  ;;  %v1725_v53 = vld [vmem:[%s2214_s3 + $0x18] sm:$0xff]  ;;  %v522_v6 = vsel %vm504_vm0, %v503_v58, %v497_v22 }
 0x12c   :  { %v1730_v56 = vperm.slane %v1725_v53, 7  ;;  %v1739_v22 = vperm.slane %v1725_v53, 6 }
 0x12d   :  { %597 = vmatpush.msrb.mxu0 %v437_v11 }
 0x12e   :  { %2237 = vst [vmem:[#allocation11_spill] sm:$0xff] %v1730_v56 }
 0x12f   :  { %598 = vmatpush.msrb.mxu0 %v433_v30  ;;  %v386_v30 = vmul.f32 %v1690_v4, %v1411_v2  ;;  %v576_v2 = vmul.f32 %v1715_v14, %v1568_v48  ;;  %v534_v4 = vmul.f32 %v1730_v56, %v522_v6  ;;  %2238 = vst [vmem:[#allocation12_spill] sm:$0xff] %v1739_v22 }
 0x131   :  { %v1696_v37 = vpop.permute.xlu0 %302  ;;  %599 = vmatpush.msrb.mxu0 %v390_v35  ;;  %v1700_v46 = vpop.permute.xlu2 %290 }
 0x132   :  { %v1698_v41 = vpop.permute.xlu1 %408 }
 0x133   :  { %600 = vmatpush.msrb.mxu0 %v386_v30 }
 0x139   :  { %v1702_v63 = vpop.permute.xlu0 %255  ;;  %v1708_v23 = vpop.permute.xlu2 %549 }
 0x13a   :  { %v1704_v40 = vpop.permute.xlu1 %351  ;;  %2235 = vst [vmem:[#allocation9_spill] sm:$0xff] %v1708_v23 }
 0x141   :  { %v1706_v11 = vpop.permute.xlu0 %208 }
 0x142   :  { %v1710_v38 = vpop.permute.xlu1 %547 }
 0x143   :  { %2236 = vst [vmem:[#allocation10_spill] sm:$0xff] %v1710_v38  ;;  %v557_v35 = vsel %vm551_vm5, %v1710_v38, %v1708_v23  ;;  %v475_v23 = vsel %vm457_vm1, %v456_v31, %v450_v17  ;;  %v530_v38 = vmul.f32 %v1730_v56, %v1496_v19  ;;  %v428_v17 = vsel %vm410_vm2, %v1698_v41, %v403_v52  ;;  %v1769_v52 = vld [vmem:[%s2214_s3 + $0x10] sm:$0xff] }
 0x144   :  { %v580_v57 = vmul.f32 %v1715_v14, %v557_v35  ;;  %v487_v6 = vmul.f32 %v1739_v22, %v475_v23  ;;  %v1758_v35 = vperm.slane %v1725_v53, 5  ;;  %v1764_v23 = vperm.slane %v1725_v53, 4 }
 0x146   :  { %707 = vmatpush.msrb.mxu3 %v580_v57  ;;  %v1746_v57 = vld [vmem:[%s2214_s3 + $0x20] ss:$0 sm:$0xff]  ;;  %v440_v56 = vmul.f32 %v1758_v35, %v428_v17 }
 0x148   :  { %708 = vmatpush.msrb.mxu3 %v576_v2  ;;  %v574_v2 = vmul.f32 %v1746_v57, %v1622_v5  ;;  %v436_v5 = vmul.f32 %v1758_v35, %v1545_v39  ;;  %v389_v39 = vmul.f32 %v1764_v23, %v1406_v1  ;;  %v1806_v1 = vperm.slane %v1769_v52, 6 }
 0x149   :  { %v1741_v30 = vpop.permute.xlu0 %543 }
 0x14a   :  { %713 = vmatpush.msra.mxu3 %v534_v4  ;;  %v555_v48 = vsel %vm551_vm5, %v1741_v30, %v1674_v47  ;;  %v483_v4 = vmul.f32 %v1739_v22, %v1511_v25  ;;  %v1774_v25 = vld [vmem:[%s2214_s3 + $0x8] sm:$0xff] }
 0x14b   :  { %v578_v19 = vmul.f32 %v1746_v57, %v555_v48 }
 0x14c   :  { %714 = vmatpush.msra.mxu3 %v530_v38  ;;  %v1777_v38 = vperm.slane %v1769_v52, 7 }
 0x14d   :  { %627 = vmatpush.msrb.mxu1 %v578_v19 }
 0x14e   :  { %715 = vmatpush.msra.mxu3 %v487_v6  ;;  %v1782_v6 = vperm.slane %v1774_v25, 7 }
 0x14f   :  { %628 = vmatpush.msrb.mxu1 %v574_v2  ;;  %v393_v2 = vmul.f32 %v1764_v23, %v1525_v32  ;;  %v529_v32 = vmul.f32 %v1777_v38, %v1493_v18  ;;  %v1818_v18 = vperm.slane %v1769_v52, 5 }
 0x150   :  { %716 = vmatpush.msra.mxu3 %v483_v4 }
 0x151   :  { %v501_v48 = vpop.permute.xlu0 %500 }
 0x152   :  { %717 = vmatpush.msra.mxu3 %v440_v56  ;;  %v509_v19 = vsel %vm504_vm0, %v1643_v12, %v501_v48  ;;  %v510_v17 = vsel %vm504_vm0, %v501_v48, %v503_v58  ;;  %v462_v56 = vsel %vm457_vm1, %v1633_v7, %v1681_v8  ;;  %v463_v12 = vsel %vm457_vm1, %v1681_v8, %v456_v31  ;;  %v1812_v8 = vld [vmem:[%s2215_s4 + $0x8] sm:$0xff] }
 0x153   :  { %v533_v4 = vmul.f32 %v1777_v38, %v510_v17  ;;  %v532_v22 = vmul.f32 %v1782_v6, %v509_v19  ;;  %v528_v58 = vmul.f32 %v1782_v6, %v1480_v13  ;;  %v486_v13 = vmul.f32 %v1806_v1, %v463_v12  ;;  %1115 = vmatmul.msk.f32.vlgmr.msrb.gmra.mxu3 %vm259_vm6, %v1812_v8 }
 0x154   :  { %718 = vmatpush.msra.mxu3 %v436_v5  ;;  %v1801_v5 = vperm.slane %v1774_v25, 6  ;;  %v1823_v48 = vperm.slane %v1774_v25, 5  ;;  %1113 = vmatmul.msk.f32.vlgmr.msrb.gmra.mxu1 %vm259_vm6, %v1812_v8  ;;  %v482_v19 = vmul.f32 %v1806_v1, %v1508_v24 }
 0x155   :  { %633 = vmatpush.msrb.mxu2 %v532_v22  ;;  %673 = vmatpush.msra.mxu1 %v533_v4 }
 0x156   :  { %719 = vmatpush.msra.mxu3 %v393_v2  ;;  %v485_v7 = vmul.f32 %v1801_v5, %v462_v56  ;;  %v481_v22 = vmul.f32 %v1801_v5, %v1499_v21  ;;  %v1839_v56 = vperm.slane %v1769_v52, 4  ;;  %v434_v24 = vmul.f32 %v1823_v48, %v1517_v28 }
 0x157   :  { %634 = vmatpush.msrb.mxu2 %v528_v58  ;;  %674 = vmatpush.msra.mxu1 %v529_v32  ;;  %v584_v58 = vld [vmem:[%s2216_s5] sm:$0xff] }
 0x158   :  { %720 = vmatpush.msra.mxu3 %v389_v39  ;;  %v1836_v39 = vperm.slane %v1774_v25, 4  ;;  %v392_v32 = vmul.f32 %v1839_v56, %v1556_v43  ;;  %v388_v28 = vmul.f32 %v1839_v56, %v1385_v60  ;;  %v1869_v60 = vperm.slane %v1769_v52, 3 }
 0x159   :  { %635 = vmatpush.msrb.mxu2 %v485_v7  ;;  %v407_v31 = vpop.permute.xlu0 %406  ;;  %675 = vmatpush.msra.mxu1 %v486_v13  ;;  %v1857_v7 = vperm.slane %v1725_v53, 3  ;;  %v1863_v13 = vperm.slane %v1650_v20, 3 }
 0x15a   :  { %v415_v17 = vsel %vm410_vm2, %v1637_v9, %v407_v31  ;;  %v416_v4 = vsel %vm410_vm2, %v407_v31, %v1698_v41  ;;  %v435_v9 = vmul.f32 %v1818_v18, %v1514_v26  ;;  %v391_v41 = vmul.f32 %v1836_v39, %v1484_v15 }
 0x15b   :  { %v439_v2 = vmul.f32 %v1818_v18, %v416_v4  ;;  %636 = vmatpush.msrb.mxu2 %v481_v22  ;;  %v438_v21 = vmul.f32 %v1823_v48, %v415_v17  ;;  %676 = vmatpush.msra.mxu1 %v482_v19  ;;  %v387_v12 = vmul.f32 %v1836_v39, %v1366_v55  ;;  %v1151_v26 = vmov 0  }
 0x15c   :  { %1131 = vset.pattern.permute.xlu1 %v1151_v26  ;;  %v358_v55 = vsel %vm353_vm3, %v1657_v29, %v1704_v40  ;;  %v1866_v31 = vperm.slane %v1774_v25, 3  ;;  %1132 = vset.pattern.permute.xlu0 %v1151_v26  ;;  %v322_v4 = vsel %vm306_vm4, %v1700_v46, %v1641_v10  ;;  %v1916_v26 = vperm.slane %v1725_v53, 2 }
 0x15d   :  { %637 = vmatpush.msrb.mxu2 %v438_v21  ;;  %677 = vmatpush.msra.mxu1 %v439_v2  ;;  %v380_v2 = vmul.f32 %v1869_v60, %v358_v55  ;;  %v1887_v21 = vperm.slane %v1650_v20, 2 }
 0x15e   :  { %587 = vperm.xlu1 %1131, %v584_v58   ;;  %v379_v17 = vmul.f32 %v1866_v31, %v1679_v49  ;;  %v374_v49 = vmul.f32 %v1863_v13, %v1595_v61  ;;  %v263_v58 = vsel %vm259_vm6, %v1645_v16, %v1702_v63 }
 0x15f   :  { %638 = vmatpush.msrb.mxu2 %v434_v24  ;;  %678 = vmatpush.msra.mxu1 %v435_v9  ;;  %v258_v24 = vpop.permute.xlu2 %257  ;;  %v375_v9 = vmul.f32 %v1866_v31, %v1528_v33  ;;  %v331_v33 = vmul.f32 %v1887_v21, %v322_v4  ;;  %v1935_v4 = vperm.slane %v1725_v53, 1 }
 0x161   :  { %639 = vmatpush.msrb.mxu2 %v391_v41  ;;  %v338_v15 = vpop.permute.xlu0 %337  ;;  %679 = vmatpush.msra.mxu1 %v392_v32  ;;  %v1894_v41 = vperm.slane %v1774_v25, 2 }
 0x162   :  { %v359_v43 = vsel %vm353_vm3, %v1704_v40, %v338_v15  ;;  %v369_v22 = vsel %vm353_vm3, %v338_v15, %v1670_v44  ;;  %v310_v40 = vsel %vm306_vm4, %v1641_v10, %v1696_v37  ;;  %v244_v44 = vpop.permute.xlu1 %243  ;;  %v376_v10 = vmul.f32 %v1869_v60, %v1539_v36 }
 0x163   :  { %v381_v29 = vmul.f32 %v1857_v7, %v359_v43  ;;  %640 = vmatpush.msrb.mxu2 %v387_v12  ;;  %v378_v19 = vmul.f32 %v1863_v13, %v369_v22  ;;  %680 = vmatpush.msra.mxu1 %v388_v28  ;;  %v377_v12 = vmul.f32 %v1857_v7, %v1592_v59  ;;  %v1910_v59 = vperm.slane %v1774_v25, 1 }
 0x164   :  { %v332_v61 = vmul.f32 %v1894_v41, %v310_v40  ;;  %v275_v32 = vsel %vm259_vm6, %v244_v44, %v1645_v16  ;;  %v327_v36 = vmul.f32 %v1887_v21, %v1554_v42  ;;  %v1913_v28 = vperm.slane %v1769_v52, 2 }
 0x165   :  { %601 = vmatpush.msrb.mxu0 %v378_v19  ;;  %641 = vmatpush.msrb.mxu2 %v379_v17  ;;  %v328_v16 = vmul.f32 %v1894_v41, %v1559_v45  ;;  %v1921_v15 = vperm.slane %v1650_v20, 1  ;;  %v1924_v42 = vperm.slane %v1769_v52, 1  ;;  %v264_v40 = vsel %vm259_vm6, %v1702_v63, %v258_v24 }
 0x166   :  { %681 = vmatpush.msra.mxu1 %v380_v2  ;;  %721 = vmatpush.msra.mxu3 %v381_v29  ;;  %v285_v29 = vmul.f32 %v1910_v59, %v263_v58  ;;  %v265_v2 = vsel %vm259_vm6, %v258_v24, %v244_v44  ;;  %v330_v63 = vmul.f32 %v1916_v26, %v1615_v3  ;;  %v1961_v24 = vperm.slane %v1725_v53, 0  ;;  %v2239_v58 = vld [vmem:[#allocation2_spill] sm:$0xff] }
 0x167   :  { %602 = vmatpush.msrb.mxu0 %v374_v49  ;;  %642 = vmatpush.msrb.mxu2 %v375_v9  ;;  %v284_v45 = vmul.f32 %v1921_v15, %v275_v32  ;;  %v280_v49 = vmul.f32 %v1921_v15, %v1574_v51  ;;  %v1948_v9 = vperm.slane %v1774_v25, 0  ;;  %v282_v44 = vmul.f32 %v1924_v42, %v1583_v54  ;;  %v189_v51 = vpop.permute.xlu2 %188  ;;  %v2240_v54 = vld [vmem:[#allocation10_spill] sm:$0xff] }
 0x168   :  { %682 = vmatpush.msra.mxu1 %v376_v10  ;;  %722 = vmatpush.msra.mxu3 %v377_v12  ;;  %v213_v10 = vsel %vm212_vm7, %v1536_v34, %v1603_v62  ;;  %v287_v3 = vmul.f32 %v1935_v4, %v265_v2  ;;  %v556_v32 = vsel %vm551_vm5, %v1674_v47, %v2240_v54  ;;  %v2243_v2 = vld [vmem:[#allocation4_spill] sm:$0xff] }
 0x169   :  { %643 = vmatpush.msrb.mxu2 %v332_v61  ;;  %v305_v55 = vpop.permute.xlu0 %304  ;;  %603 = vmatpush.msrb.mxu0 %v331_v33  ;;  %v286_v61 = vmul.f32 %v1924_v42, %v264_v40  ;;  %v1968_v33 = vperm.slane %v1769_v52, 0  ;;  %v1982_v52 = vld [vmem:[%s2214_s3 + $0x28] ss:$0 sm:$0xff] }
 0x16a   :  { %v311_v43 = vsel %vm306_vm4, %v1696_v37, %v305_v55  ;;  %v312_v22 = vsel %vm306_vm4, %v305_v55, %v1700_v46  ;;  %v216_v37 = vsel %vm212_vm7, %v1655_v27, %v1706_v11  ;;  %v281_v46 = vmul.f32 %v1910_v59, %v1571_v50  ;;  %v211_v12 = vpop.permute.xlu1 %210 }
 0x16b   :  { %v333_v19 = vmul.f32 %v1913_v28, %v311_v43  ;;  %v334_v17 = vmul.f32 %v1916_v26, %v312_v22  ;;  %604 = vmatpush.msrb.mxu0 %v327_v36  ;;  %644 = vmatpush.msrb.mxu2 %v328_v16  ;;  %v329_v50 = vmul.f32 %v1913_v28, %v1612_v0  ;;  %v1977_v16 = vperm.slane %v1650_v20, 0  ;;  %v582_v20 = vld [vmem:[%s2215_s4] sm:$0xff] }
 0x16c   :  { %v238_v25 = vmul.f32 %v1948_v9, %v216_v37  ;;  %v283_v0 = vmul.f32 %v1935_v4, %v2239_v58  ;;  %v217_v53 = vsel %vm212_vm7, %v1706_v11, %v211_v12  ;;  %v234_v55 = vmul.f32 %v1948_v9, %v213_v10 }
 0x16d   :  { %605 = vmatpush.msrb.mxu0 %v284_v45  ;;  %645 = vmatpush.msrb.mxu2 %v285_v29  ;;  %v227_v43 = vsel %vm212_vm7, %v189_v51, %v1536_v34  ;;  %v2241_v34 = vld [vmem:[#allocation9_spill] sm:$0xff]  ;;  %v239_v45 = vmul.f32 %v1968_v33, %v217_v53 }
 0x16e   :  { %683 = vmatpush.msra.mxu1 %v333_v19  ;;  %723 = vmatpush.msra.mxu3 %v334_v17  ;;  %v579_v19 = vmul.f32 %v1982_v52, %v556_v32  ;;  %v569_v17 = vsel %vm551_vm5, %v2241_v34, %v1741_v30  ;;  %v233_v37 = vmul.f32 %v1977_v16, %v227_v43  ;;  %v1152_v34 = vmov 512.0  }
 0x16f   :  { %606 = vmatpush.msrb.mxu0 %v280_v49  ;;  %646 = vmatpush.msrb.mxu2 %v281_v46  ;;  %v2242_v46 = vld [vmem:[#allocation3_spill] sm:$0xff]  ;;  %1137 = vrcp.f32 %v1152_v34 }
 0x170   :  { %684 = vmatpush.msra.mxu1 %v329_v50  ;;  %724 = vmatpush.msra.mxu3 %v330_v63  ;;  %v575_v40 = vmul.f32 %v1982_v52, %v2242_v46 }
 0x171   :  { %647 = vmatpush.msrb.mxu2 %v238_v25  ;;  %v191_v36 = vpop.permute.xlu0 %190 }
 0x172   :  { %685 = vmatpush.msra.mxu1 %v286_v61  ;;  %725 = vmatpush.msra.mxu3 %v287_v3  ;;  %v218_v47 = vsel %vm212_vm7, %v211_v12, %v191_v36  ;;  %v228_v11 = vsel %vm212_vm7, %v191_v36, %v1655_v27  ;;  %v2002_v27 = vld [vmem:[%s2214_s3 + $0x38] ss:$0 sm:$0xff] }
 0x173   :  { %v240_v22 = vmul.f32 %v1961_v24, %v218_v47  ;;  %648 = vmatpush.msrb.mxu2 %v234_v55  ;;  %v237_v29 = vmul.f32 %v1977_v16, %v228_v11  ;;  %v581_v30 = vmul.f32 %v2002_v27, %v569_v17  ;;  %v577_v49 = vmul.f32 %v2002_v27, %v2243_v2 }
 0x174   :  { %686 = vmatpush.msra.mxu1 %v282_v44  ;;  %726 = vmatpush.msra.mxu3 %v283_v0 }
 0x175   :  { %649 = vmatmul.f32.vlgmr.msrb.gmra.mxu2 %v582_v20  ;;  %607 = vmatpush.msrb.mxu0 %v237_v29  ;;  %v1138_v17 = vpop.eup %1137 }
 0x176   :  { %667 = vmatpush.msra.mxu2 %v579_v19  ;;  %687 = vmatpush.msra.mxu1 %v239_v45  ;;  %v759_v45 = vmul.f32 512.0, %v1138_v17  ;;  %vm763_vm8 = vweird.f32 %v1138_v17 }
 0x177   :  { %727 = vmatpush.msra.mxu3 %v240_v22  ;;  %608 = vmatpush.msrb.mxu0 %v233_v37 }
 0x178   :  { %668 = vmatpush.msra.mxu2 %v575_v40  ;;  %609 = vmatmul.f32.vlgmr.msrb.gmra.mxu0 %v582_v20  ;;  %v760_v37 = vsub.f32 1.0, %v759_v45 }
 0x179   :  { %747 = vmatpush.msra.mxu0 %v581_v30  ;;  %v205_v10 = vpop.permute.xlu0 %204 }
 0x17a   :  { %v214_v50 = vsel %vm212_vm7, %v1603_v62, %v205_v10  ;;  %v215_v63 = vsel %vm212_vm7, %v205_v10, %v189_v51  ;;  %v761_v46 = vmul.f32 %v1138_v17, %v760_v37 }
 0x17b   :  { %v235_v12 = vmul.f32 %v1968_v33, %v214_v50  ;;  %v236_v44 = vmul.f32 %v1961_v24, %v215_v63  ;;  %748 = vmatpush.msra.mxu0 %v577_v49 }
 0x17c   :  { %v762_v40 = vadd.f32 %v1138_v17, %v761_v46 }
 0x17d   :  { %1114 = vmatmul.msk.f32.vlgmr.msra.gmra.mxu2 %vm259_vm6, %v1812_v8  ;;  %688 = vmatpush.msra.mxu1 %v235_v12 }
 0x17e   :  { %728 = vmatpush.msra.mxu3 %v236_v44  ;;  %689 = vmatmul.f32.vlgmr.msra.gmra.mxu1 %v582_v20  ;;  %v2019_v30 = vsel %vm763_vm8, %v1138_v17, %v762_v40 }
 0x17f   :  { %729 = vmatmul.f32.vlgmr.msra.gmra.mxu3 %v582_v20 }
 0x180   :  { %1116 = vmatmul.msk.f32.vlgmr.msra.gmra.mxu0 %vm259_vm6, %v1812_v8 }
 0x1d0   :  { %v588_v0 = vpop.permute.xlu1 %587 }
 0x1d1   :  { %v630_v25 = vpop.f32.mrf.mxu1 }
 0x1d6   :  { %v710_v62 = vpop.f32.mrf.mxu3 }
 0x1f5   :  { %v610_v51 = vpop.f32.mrf.mxu0 }
 0x1f6   :  { %v611_v3 = vadd.f32 %v610_v51, %v588_v0 }
 0x1f8   :  { %v650_v58 = vpop.f32.mrf.mxu2  ;;  %v631_v36 = vadd.f32 %v630_v25, %v611_v3 }
 0x1f9   :  { %v651_v54 = vadd.f32 %v650_v58, %v588_v0 }
 0x1fb   :  { %v690_v61 = vpop.f32.mrf.mxu1 }
 0x1fc   :  { %v691_v32 = vadd.f32 %v690_v61, %v588_v0 }
 0x1fd   :  { %v750_v47 = vpop.f32.mrf.mxu0 }
 0x1fe   :  { %v711_v11 = vadd.f32 %v710_v62, %v691_v32 }
 0x200   :  { %v670_v53 = vpop.f32.mrf.mxu2 }
 0x201   :  { %v671_v55 = vadd.f32 %v670_v53, %v651_v54 }
 0x202   :  { %v730_v43 = vpop.f32.mrf.mxu3 }
 0x203   :  { %v753_v22 = vadd.f32 %v671_v55, %v631_v36  ;;  %v731_v20 = vadd.f32 %v730_v43, %v588_v0 }
 0x205   :  { %v751_v29 = vadd.f32 %v750_v47, %v731_v20  ;;  %v754_v19 = vadd.f32 %v753_v22, %v711_v11 }
 0x207   :  { %v755_v8 = vadd.f32 %v754_v19, %v751_v29 }
 0x209   :  { %756 = vadd.xlane.f32.xlu2 %v755_v8 }
 0x27c   :  { %v757_v2 = vpop.xlane.xlu2 %756 }
 0x27d   :  { %v765_v49 = vmul.f32 %v2019_v30, %v757_v2 }
 0x27f   :  { %v766_v10 = vsub.f32 %v631_v36, %v765_v49  ;;  %v767_v50 = vsub.f32 %v671_v55, %v765_v49  ;;  %v768_v63 = vsub.f32 %v711_v11, %v765_v49  ;;  %v769_v12 = vsub.f32 %v751_v29, %v765_v49 }
 0x281   :  { %v770_v44 = vmul.f32 %v766_v10, %v766_v10  ;;  %v771_v25 = vmul.f32 %v767_v50, %v767_v50  ;;  %v772_v58 = vmul.f32 %v768_v63, %v768_v63  ;;  %v773_v0 = vmul.f32 %v769_v12, %v769_v12 }
 0x283   :  { %v774_v62 = vadd.f32 %v771_v25, %v770_v44 }
 0x285   :  { %v775_v51 = vadd.f32 %v774_v62, %v772_v58 }
 0x287   :  { %v776_v61 = vadd.f32 %v775_v51, %v773_v0 }
 0x289   :  { %777 = vadd.xlane.f32.xlu0 %v776_v61  ;;  %v2244_v61 = vld [vmem:[#allocation5_spill] sm:$0xff] }
 0x2fc   :  { %v778_v3 = vpop.xlane.xlu0 %777 }
 0x2fd   :  { %v779_v54 = vmul.f32 %v778_v3, %v2019_v30 }
 0x2ff   :  { %v780_v32 = vadd.f32 1e-05, %v779_v54 }
 0x301   :  { %1139 = vrsqrt.f32 %v780_v32  ;;  %vm787_vm10 = vweird.f32 %v780_v32 }
 0x307   :  { %v1140_v53 = vpop.eup %1139 }
 0x308   :  { %v782_v43 = vmul.f32 %v1140_v53, %v780_v32  ;;  %vm788_vm9 = vweird.f32 %v1140_v53 }
 0x309   :  { %vm789_vm11 = vmor %vm787_vm10, %vm788_vm9 }
 0x30a   :  { %v783_v47 = vmul.f32 %v1140_v53, %v782_v43 }
 0x30c   :  { %v784_v36 = vmul.f32 0.5, %v783_v47 }
 0x30e   :  { %v785_v55 = vsub.f32 1.5, %v784_v36 }
 0x310   :  { %v786_v11 = vmul.f32 %v1140_v53, %v785_v55 }
 0x312   :  { %v790_v22 = vsel %vm789_vm11, %v1140_v53, %v786_v11 }
 0x313   :  { %v791_v20 = vmul.f32 %v790_v22, %v766_v10  ;;  %v792_v29 = vmul.f32 %v790_v22, %v767_v50  ;;  %v793_v34 = vmul.f32 %v790_v22, %v768_v63  ;;  %v794_v17 = vmul.f32 %v790_v22, %v769_v12 }
 0x315   :  { %v2023_v19 = vmax.f32 %v791_v20, 0.0  ;;  %v2025_v8 = vmax.f32 %v792_v29, 0.0  ;;  %v2033_v45 = vmax.f32 %v793_v34, 0.0  ;;  %v2035_v37 = vmax.f32 %v794_v17, 0.0 }
 0x317   :  { %914 = vrot.lane.b32.xlu2 %v2025_v8, %s1144_s17  ;;  %891 = vrot.lane.b32.xlu0 %v2023_v19, %s1145_s20 }
 0x318   :  { %954 = vrot.lane.b32.xlu1 %v2023_v19, %s1150_s15 }
 0x31f   :  { %958 = vrot.lane.b32.xlu2 %v2033_v45, %s1150_s15  ;;  %918 = vrot.lane.b32.xlu0 %v2035_v37, %s1144_s17 }
 0x320   :  { %956 = vrot.lane.b32.xlu1 %v2025_v8, %s1150_s15 }
 0x327   :  { %866 = vrot.lane.b32.xlu2 %v2035_v37, %s1147_s1  ;;  %869 = vrot.lane.b32.xlu0 %v2023_v19, %s1147_s1 }
 0x328   :  { %933 = vrot.lane.b32.xlu1 %v2023_v19, %s1143_s10 }
 0x32f   :  { %916 = vrot.lane.b32.xlu2 %v2033_v45, %s1144_s17  ;;  %845 = vrot.lane.b32.xlu0 %v2035_v37, %s1146_s2 }
 0x330   :  { %935 = vrot.lane.b32.xlu1 %v2025_v8, %s1143_s10 }
 0x337   :  { %895 = vrot.lane.b32.xlu2 %v2033_v45, %s1145_s20  ;;  %824 = vrot.lane.b32.xlu0 %v2035_v37, %s1149_s14 }
 0x338   :  { %912 = vrot.lane.b32.xlu1 %v2023_v19, %s1144_s17 }
 0x33f   :  { %873 = vrot.lane.b32.xlu2 %v2033_v45, %s1147_s1  ;;  %800 = vrot.lane.b32.xlu0 %v2035_v37, %s1148_s13 }
 0x340   :  { %960 = vrot.lane.b32.xlu1 %v2035_v37, %s1150_s15 }
 0x347   :  { %852 = vrot.lane.b32.xlu2 %v2033_v45, %s1146_s2  ;;  %871 = vrot.lane.b32.xlu0 %v2025_v8, %s1147_s1 }
 0x348   :  { %893 = vrot.lane.b32.xlu1 %v2025_v8, %s1145_s20 }
 0x34f   :  { %850 = vrot.lane.b32.xlu2 %v2025_v8, %s1146_s2  ;;  %810 = vrot.lane.b32.xlu0 %v2033_v45, %s1148_s13 }
 0x350   :  { %939 = vrot.lane.b32.xlu1 %v2035_v37, %s1143_s10 }
 0x357   :  { %808 = vrot.lane.b32.xlu2 %v2025_v8, %s1148_s13 }
 0x358   :  { %937 = vrot.lane.b32.xlu1 %v2033_v45, %s1143_s10 }
 0x360   :  { %897 = vrot.lane.b32.xlu1 %v2035_v37, %s1145_s20 }
 0x368   :  { %848 = vrot.lane.b32.xlu1 %v2023_v19, %s1146_s2 }
 0x370   :  { %827 = vrot.lane.b32.xlu1 %v2023_v19, %s1149_s14 }
 0x371   :  { %v915_v46 = vpop.permute.xlu2 %914 }
 0x378   :  { %806 = vrot.lane.b32.xlu1 %v2023_v19, %s1148_s13 }
 0x379   :  { %v959_v2 = vpop.permute.xlu2 %958 }
 0x380   :  { %831 = vrot.lane.b32.xlu1 %v2033_v45, %s1149_s14 }
 0x381   :  { %v2101_v62 = vpop.permute.xlu2 %866 }
 0x388   :  { %829 = vrot.lane.b32.xlu1 %v2025_v8, %s1149_s14 }
 0x389   :  { %v2095_v49 = vpop.permute.xlu0 %891  ;;  %v917_v43 = vpop.permute.xlu2 %916 }
 0x38a   :  { %v955_v40 = vpop.permute.xlu1 %954 }
 0x391   :  { %v919_v58 = vpop.permute.xlu0 %918  ;;  %v896_v29 = vpop.permute.xlu2 %895 }
 0x392   :  { %v957_v10 = vpop.permute.xlu1 %956 }
 0x393   :  { %v962_v50 = vsel %vm551_vm5, %v955_v40, %v957_v10  ;;  %v963_v63 = vsel %vm551_vm5, %v957_v10, %v959_v2 }
 0x394   :  { %v971_v12 = vmul.f32 %v1746_v57, %v962_v50  ;;  %v972_v44 = vmul.f32 %v1982_v52, %v963_v63  ;;  %v2245_v57 = vld [vmem:[#allocation6_spill] sm:$0xff]  ;;  %v2246_v50 = vld [vmem:[#allocation7_spill] sm:$0xff] }
 0x396   :  { %993 = vmatpush.msrb.mxu2 %v971_v12  ;;  %1013 = vmatpush.msrb.mxu0 %v972_v44 }
 0x399   :  { %v870_v54 = vpop.permute.xlu0 %869  ;;  %v874_v12 = vpop.permute.xlu2 %873 }
 0x39a   :  { %v934_v25 = vpop.permute.xlu1 %933 }
 0x3a1   :  { %v2107_v52 = vpop.permute.xlu0 %845 }
 0x3a2   :  { %v936_v0 = vpop.permute.xlu1 %935 }
 0x3a3   :  { %v941_v51 = vsel %vm504_vm0, %v934_v25, %v936_v0 }
 0x3a4   :  { %v950_v3 = vmul.f32 %v941_v51, %v2244_v61 }
 0x3a6   :  { %994 = vmatpush.msrb.mxu2 %v950_v3 }
 0x3a9   :  { %v2113_v34 = vpop.permute.xlu0 %824 }
 0x3aa   :  { %v913_v32 = vpop.permute.xlu1 %912 }
 0x3ab   :  { %v920_v53 = vsel %vm457_vm1, %v913_v32, %v915_v46  ;;  %v928_v51 = vsel %vm457_vm1, %v919_v58, %v913_v32 }
 0x3ac   :  { %v929_v47 = vmul.f32 %v920_v53, %v2245_v57  ;;  %v2248_v53 = vld [vmem:[#allocation11_spill] sm:$0xff] }
 0x3ae   :  { %995 = vmatpush.msrb.mxu2 %v929_v47  ;;  %v2249_v47 = vld [vmem:[#allocation12_spill] sm:$0xff] }
 0x3b1   :  { %v2125_v3 = vpop.permute.xlu0 %800 }
 0x3b2   :  { %v961_v36 = vpop.permute.xlu1 %960 }
 0x3b3   :  { %v964_v55 = vsel %vm551_vm5, %v959_v2, %v961_v36  ;;  %v970_v11 = vsel %vm551_vm5, %v961_v36, %v955_v40  ;;  %v882_v2 = vsel %vm353_vm3, %v2101_v62, %v870_v54  ;;  %v2247_v40 = vld [vmem:[#allocation8_spill] sm:$0xff]  ;;  %v932_v36 = vmul.f32 %v928_v51, %v2249_v47 }
 0x3b4   :  { %v973_v22 = vmul.f32 %v1715_v14, %v964_v55  ;;  %v974_v20 = vmul.f32 %v2002_v27, %v970_v11  ;;  %v887_v14 = vmul.f32 %v2023_v19, %v2247_v40  ;;  %v883_v27 = vmul.f32 %v882_v2, %v1863_v13  ;;  %v853_v55 = vpop.permute.xlu2 %852 }
 0x3b5   :  { %v921_v11 = vsel %vm457_vm1, %v915_v46, %v917_v43  ;;  %v922_v13 = vsel %vm457_vm1, %v917_v43, %v919_v58  ;;  %v877_v40 = vsel %vm353_vm3, %v874_v12, %v2101_v62 }
 0x3b6   :  { %1033 = vmatpush.msrb.mxu1 %v973_v22  ;;  %1053 = vmatpush.msrb.mxu3 %v974_v20 }
 0x3b9   :  { %v872_v2 = vpop.permute.xlu0 %871 }
 0x3ba   :  { %v894_v17 = vpop.permute.xlu1 %893  ;;  %v875_v58 = vsel %vm353_vm3, %v870_v54, %v872_v2  ;;  %v876_v54 = vsel %vm353_vm3, %v872_v2, %v874_v12  ;;  %v975_v12 = vld [vmem:[%s2218_s6] sm:$0xff] }
 0x3bb   :  { %v899_v10 = vsel %vm410_vm2, %v2095_v49, %v894_v17  ;;  %v884_v43 = vmul.f32 %v875_v58, %v1866_v31  ;;  %v890_v31 = vmul.f32 %v2035_v37, %v1764_v23 }
 0x3bc   :  { %v908_v63 = vmul.f32 %v899_v10, %v2246_v50  ;;  %v900_v10 = vsel %vm410_vm2, %v894_v17, %v896_v29  ;;  %v930_v50 = vmul.f32 %v921_v11, %v1801_v5 }
 0x3bd   :  { %v909_v46 = vmul.f32 %v900_v10, %v1823_v48 }
 0x3be   :  { %996 = vmatpush.msrb.mxu2 %v908_v63  ;;  %v931_v63 = vmul.f32 %v922_v13, %v1806_v1  ;;  %v851_v1 = vpop.permute.xlu2 %850 }
 0x3c0   :  { %997 = vmatpush.msrb.mxu2 %v887_v14 }
 0x3c2   :  { %v940_v44 = vpop.permute.xlu1 %939  ;;  %998 = vmatpush.msrb.mxu2 %v883_v27  ;;  %v811_v27 = vpop.permute.xlu0 %810 }
 0x3c3   :  { %v949_v61 = vsel %vm504_vm0, %v940_v44, %v934_v25 }
 0x3c4   :  { %v953_v57 = vmul.f32 %v949_v61, %v2248_v53 }
 0x3c6   :  { %1054 = vmatpush.msrb.mxu3 %v953_v57  ;;  %v809_v53 = vpop.permute.xlu2 %808 }
 0x3c7   :  { %v813_v47 = vsel %vm212_vm7, %v809_v53, %v811_v27 }
 0x3c8   :  { %1055 = vmatpush.msrb.mxu3 %v932_v36 }
 0x3ca   :  { %v938_v19 = vpop.permute.xlu1 %937 }
 0x3cb   :  { %v942_v22 = vsel %vm504_vm0, %v936_v0, %v938_v19  ;;  %v943_v32 = vsel %vm504_vm0, %v938_v19, %v940_v44 }
 0x3cc   :  { %v951_v25 = vmul.f32 %v942_v22, %v1782_v6  ;;  %v952_v20 = vmul.f32 %v943_v32, %v1777_v38  ;;  %v888_v38 = vmul.f32 %v2025_v8, %v1836_v39  ;;  %v889_v39 = vmul.f32 %v2033_v45, %v1839_v56 }
 0x3cd   :  { %v855_v8 = vsel %vm306_vm4, %v851_v1, %v853_v55 }
 0x3ce   :  { %1014 = vmatpush.msrb.mxu0 %v951_v25  ;;  %1034 = vmatpush.msrb.mxu1 %v952_v20  ;;  %v864_v62 = vmul.f32 %v855_v8, %v1913_v28 }
 0x3d0   :  { %1015 = vmatpush.msrb.mxu0 %v930_v50  ;;  %1035 = vmatpush.msrb.mxu1 %v931_v63 }
 0x3d2   :  { %1016 = vmatpush.msrb.mxu0 %v909_v46  ;;  %v898_v0 = vpop.permute.xlu1 %897 }
 0x3d3   :  { %v901_v6 = vsel %vm410_vm2, %v896_v29, %v898_v0  ;;  %v907_v5 = vsel %vm410_vm2, %v898_v0, %v2095_v49  ;;  %v886_v49 = vmul.f32 %v877_v40, %v1857_v7  ;;  %v976_v7 = vld [vmem:[%s2217_s7] sm:$0xff] }
 0x3d4   :  { %v910_v17 = vmul.f32 %v901_v6, %v1818_v18  ;;  %v911_v48 = vmul.f32 %v907_v5, %v1758_v35  ;;  %1017 = vmatpush.msrb.mxu0 %v888_v38  ;;  %v856_v35 = vsel %vm306_vm4, %v853_v55, %v2107_v52  ;;  %v885_v18 = vmul.f32 %v876_v54, %v1869_v60 }
 0x3d5   :  { %v865_v56 = vmul.f32 %v856_v35, %v1916_v26  ;;  %979 = vperm.xlu0 %1132, %v976_v7  }
 0x3d6   :  { %1018 = vmatpush.msrb.mxu0 %v884_v43  ;;  %1036 = vmatpush.msrb.mxu1 %v910_v17 }
 0x3d7   :  { %1056 = vmatpush.msrb.mxu3 %v911_v48 }
 0x3d8   :  { %1037 = vmatpush.msrb.mxu1 %v889_v39 }
 0x3d9   :  { %1057 = vmatpush.msrb.mxu3 %v890_v31 }
 0x3da   :  { %1038 = vmatpush.msrb.mxu1 %v885_v18  ;;  %v849_v29 = vpop.permute.xlu1 %848 }
 0x3db   :  { %1058 = vmatpush.msrb.mxu3 %v886_v49  ;;  %v854_v45 = vsel %vm306_vm4, %v849_v29, %v851_v1  ;;  %v861_v23 = vsel %vm306_vm4, %v2107_v52, %v849_v29 }
 0x3dc   :  { %v862_v37 = vmul.f32 %v861_v23, %v1887_v21  ;;  %v863_v60 = vmul.f32 %v854_v45, %v1894_v41  ;;  %1039 = vmatpush.msrb.mxu1 %v864_v62 }
 0x3dd   :  { %1059 = vmatpush.msrb.mxu3 %v865_v56 }
 0x3de   :  { %999 = vmatpush.msrb.mxu2 %v862_v37  ;;  %1019 = vmatpush.msrb.mxu0 %v863_v60 }
 0x3e2   :  { %v828_v28 = vpop.permute.xlu1 %827 }
 0x3e3   :  { %v840_v26 = vsel %vm259_vm6, %v2113_v34, %v828_v28 }
 0x3e4   :  { %v841_v14 = vmul.f32 %v840_v26, %v1921_v15  ;;  %v814_v15 = vsel %vm212_vm7, %v811_v27, %v2125_v3 }
 0x3e6   :  { %1000 = vmatpush.msrb.mxu2 %v841_v14 }
 0x3ea   :  { %v807_v52 = vpop.permute.xlu1 %806 }
 0x3eb   :  { %v819_v21 = vsel %vm212_vm7, %v2125_v3, %v807_v52  ;;  %v812_v36 = vsel %vm212_vm7, %v807_v52, %v809_v53 }
 0x3ec   :  { %v820_v41 = vmul.f32 %v819_v21, %v1977_v16  ;;  %v823_v16 = vmul.f32 %v814_v15, %v1961_v24  ;;  %v822_v24 = vmul.f32 %v813_v47, %v1968_v33  ;;  %v821_v19 = vmul.f32 %v812_v36, %v1948_v9 }
 0x3ee   :  { %1001 = vmatpush.msrb.mxu2 %v820_v41 }
 0x3ef   :  { %1117 = vmatmul.msk.f32.vlgmr.msrb.gmra.mxu2 %vm982_vm12, %v975_v12 }
 0x3f2   :  { %v832_v44 = vpop.permute.xlu1 %831 }
 0x3f3   :  { %v835_v51 = vsel %vm259_vm6, %v832_v44, %v2113_v34 }
 0x3f4   :  { %v844_v61 = vmul.f32 %v835_v51, %v1935_v4 }
 0x3f6   :  { %1060 = vmatpush.msrb.mxu3 %v844_v61 }
 0x3f8   :  { %1061 = vmatpush.msrb.mxu3 %v823_v16 }
 0x3f9   :  { %1120 = vmatmul.msk.f32.vlgmr.msrb.gmra.mxu3 %vm982_vm12, %v975_v12 }
 0x3fa   :  { %v830_v57 = vpop.permute.xlu1 %829 }
 0x3fb   :  { %v833_v55 = vsel %vm259_vm6, %v828_v28, %v830_v57  ;;  %v834_v3 = vsel %vm259_vm6, %v830_v57, %v832_v44 }
 0x3fc   :  { %v842_v34 = vmul.f32 %v833_v55, %v1910_v59  ;;  %v843_v4 = vmul.f32 %v834_v3, %v1924_v42 }
 0x3fe   :  { %1020 = vmatpush.msrb.mxu0 %v842_v34  ;;  %1040 = vmatpush.msrb.mxu1 %v843_v4 }
 0x400   :  { %1021 = vmatpush.msrb.mxu0 %v821_v19  ;;  %1041 = vmatpush.msrb.mxu1 %v822_v24 }
 0x401   :  { %1118 = vmatmul.msk.f32.vlgmr.msrb.gmra.mxu0 %vm982_vm12, %v975_v12  ;;  %1119 = vmatmul.msk.f32.vlgmr.msrb.gmra.mxu1 %vm982_vm12, %v975_v12 }
 0x447   :  { %v980_v11 = vpop.permute.xlu0 %979 }
 0x472   :  { %v1003_v13 = vpop.f32.mrf.mxu2 }
 0x473   :  { %v1004_v22 = vadd.f32 %v1003_v13, %v980_v11 }
 0x47c   :  { %v1063_v20 = vpop.f32.mrf.mxu3 }
 0x47d   :  { %v1064_v50 = vadd.f32 %v1063_v20, %v980_v11 }
 0x47e   :  { %v1023_v32 = vpop.f32.mrf.mxu0  ;;  %v1043_v25 = vpop.f32.mrf.mxu1 }
 0x47f   :  { %v1024_v59 = vadd.f32 %v1023_v32, %v980_v11  ;;  %v1044_v10 = vadd.f32 %v1043_v25, %v980_v11 }
 0x481   :  { %v1066_v42 = vadd.f32 %v1024_v59, %v1004_v22 }
 0x483   :  { %v1067_v33 = vadd.f32 %v1066_v42, %v1044_v10 }
 0x485   :  { %v1068_v9 = vadd.f32 %v1067_v33, %v1064_v50 }
 0x487   :  { %1069 = vadd.xlane.f32.xlu1 %v1068_v9 }
 0x4fa   :  { %v1070_v63 = vpop.xlane.xlu1 %1069 }
 0x4fb   :  { %v1071_v2 = vmul.f32 %v1070_v63, %v2019_v30 }
 0x4fd   :  { %v1072_v46 = vsub.f32 %v1004_v22, %v1071_v2  ;;  %v1073_v58 = vsub.f32 %v1024_v59, %v1071_v2  ;;  %v1074_v0 = vsub.f32 %v1044_v10, %v1071_v2  ;;  %v1075_v38 = vsub.f32 %v1064_v50, %v1071_v2 }
 0x4ff   :  { %v1076_v6 = vmul.f32 %v1072_v46, %v1072_v46  ;;  %v1077_v5 = vmul.f32 %v1073_v58, %v1073_v58  ;;  %v1078_v1 = vmul.f32 %v1074_v0, %v1074_v0  ;;  %v1079_v17 = vmul.f32 %v1075_v38, %v1075_v38 }
 0x501   :  { %v1080_v43 = vadd.f32 %v1077_v5, %v1076_v6 }
 0x503   :  { %v1081_v48 = vadd.f32 %v1080_v43, %v1078_v1 }
 0x505   :  { %v1082_v54 = vadd.f32 %v1081_v48, %v1079_v17 }
 0x507   :  { %1083 = vadd.xlane.f32.xlu2 %v1082_v54 }
 0x57a   :  { %v1084_v40 = vpop.xlane.xlu2 %1083 }
 0x57b   :  { %v1085_v39 = vmul.f32 %v1084_v40, %v2019_v30 }
 0x57d   :  { %v1086_v8 = vadd.f32 1e-05, %v1085_v39 }
 0x57f   :  { %1141 = vrsqrt.f32 %v1086_v8  ;;  %vm1093_vm14 = vweird.f32 %v1086_v8 }
 0x585   :  { %v1142_v31 = vpop.eup %1141 }
 0x586   :  { %v1088_v35 = vmul.f32 %v1142_v31, %v1086_v8  ;;  %vm1094_vm13 = vweird.f32 %v1142_v31 }
 0x587   :  { %vm1095_vm15 = vmor %vm1093_vm14, %vm1094_vm13 }
 0x588   :  { %v1089_v18 = vmul.f32 %v1142_v31, %v1088_v35 }
 0x58a   :  { %v1090_v49 = vmul.f32 0.5, %v1089_v18 }
 0x58c   :  { %v1091_v62 = vsub.f32 1.5, %v1090_v49 }
 0x58e   :  { %v1092_v29 = vmul.f32 %v1142_v31, %v1091_v62 }
 0x590   :  { %v1096_v56 = vsel %vm1095_vm15, %v1142_v31, %v1092_v29 }
 0x591   :  { %v1097_v45 = vmul.f32 %v1096_v56, %v1072_v46  ;;  %v1098_v23 = vmul.f32 %v1096_v56, %v1073_v58  ;;  %v1099_v37 = vmul.f32 %v1096_v56, %v1074_v0  ;;  %v1100_v60 = vmul.f32 %v1096_v56, %v1075_v38 }
 0x593   :  { %v1101_v7 = vmax.f32 %v1097_v45, 0.0  ;;  %v1102_v28 = vmax.f32 %v1098_v23, 0.0  ;;  %v1103_v26 = vmax.f32 %v1099_v37, 0.0  ;;  %v1104_v30 = vmax.f32 %v1100_v60, 0.0 }
 0x595   :  { %1105 = vst [vmem:[%s2219_s8] sm:$0xff] %v1101_v7 }
 0x596   :  { %1106 = vst [vmem:[%s2219_s8 + $0x8] sm:$0xff] %v1102_v28 }
 0x597   :  { %1107 = vst [vmem:[%s2219_s8 + $0x10] sm:$0xff] %v1103_v26 }
 0x598   :  { %1108 = vst [vmem:[%s2219_s8 + $0x18] sm:$0xff] %v1104_v30 }

</bundles_post_ra>
